<compile_context>
chip_gen: v5e
topology: v5e:2x2
jax: 0.10.0
libtpu: 0.0.40
codegen_flags: <defaults>
</compile_context>

<pallas_src>
import jax
import jax.numpy as jnp
from jax.experimental import pallas as pl
from jax.experimental.pallas import tpu as pltpu


def _round_up(x, m):
    return ((x + m - 1) // m) * m


def _coarse_extractor_kernel(feat_ref, w_ref, b_ref, out_ref):
    # bottleneck: Linear(2048, 256) -> ReLU   (Dropout = identity, eval mode)
    # bf16 operands, f32 accumulation on the MXU; bias add + ReLU in f32.
    h = jnp.dot(feat_ref[...], w_ref[...],
                preferred_element_type=jnp.float32)
    h = h + b_ref[...]
    out_ref[...] = jnp.maximum(h, 0.0).astype(out_ref.dtype)


def coarse_extractor_forward(features, w, b, *, tm=128):
    """Pallas implementation of coarse_extractor.forward (post-backbone part).

    features : (B, 2048) float32   -- output of Resnet50Fc backbone
    w        : (2048, 256) float32 -- transposed PyTorch bottleneck weight
    b        : (256,) float32      -- bottleneck bias
    returns  : out_bottleneck (B, 256) float32
    """
    B, F = features.shape
    H = w.shape[1]

    # Batch tile: large (128) for MXU M utilization; shrink for tiny batches
    # (must stay a multiple of 8 for the sublane constraint).
    tm = min(tm, _round_up(B, 8))
    Bp = _round_up(B, tm)

    # bf16 operands (halves DMA traffic, native MXU dtype); f32 accumulate.
    feat = features.astype(jnp.bfloat16)
    if Bp != B:
        feat = jnp.pad(feat, ((0, Bp - B), (0, 0)))
    w_bf16 = w.astype(jnp.bfloat16)
    b_2d = b.reshape(1, H).astype(jnp.float32)

    grid = (Bp // tm,)

    out = pl.pallas_call(
        _coarse_extractor_kernel,
        out_shape=jax.ShapeDtypeStruct((Bp, H), jnp.float32),
        grid_spec=pltpu.PrefetchScalarGridSpec(
            num_scalar_prefetch=0,
            grid=grid,
            in_specs=[
                pl.BlockSpec((tm, F), lambda i: (i, 0)),   # features tile
                pl.BlockSpec((F, H), lambda i: (0, 0)),    # bottleneck weight
                pl.BlockSpec((1, H), lambda i: (0, 0)),    # bottleneck bias
            ],
            out_specs=pl.BlockSpec((tm, H), lambda i: (i, 0)),
        ),
        compiler_params=pltpu.CompilerParams(
            dimension_semantics=("parallel",)),
    )(feat, w_bf16, b_2d)

    return out[:B] if Bp != B else out


def init_coarse_extractor_params(key, feature_len=2048, bottleneck_dim=256):
    """Deterministic init matching the PyTorch module's __init__."""
    # bottleneck.weight.data.normal_(0, 0.005); bias.fill_(0.1)
    w = jax.random.normal(key, (feature_len, bottleneck_dim),
                          jnp.float32) * 0.005
    b = jnp.full((bottleneck_dim,), 0.1, jnp.float32)
    return w, b


def coarse_extractor_reference(features, w, b):
    """Pure-JAX f32 reference for verification (eval mode: dropout = id)."""
    return jnp.maximum(features @ w + b, 0.0)


if __name__ == "__main__":
    key = jax.random.PRNGKey(0)
    k_feat, k_param = jax.random.split(key)

    B = 16              # small test batch
    FEATURE_LEN = 2048  # fixed by the module (ResNet50 feature length)

    # Stand-in for model_fc(x) output features.
    features = jax.random.normal(k_feat, (B, FEATURE_LEN), jnp.float32)
    w, b = init_coarse_extractor_params(k_param, FEATURE_LEN, 256)

    out_bottleneck = coarse_extractor_forward(features, w, b)
    jax.block_until_ready(out_bottleneck)

    ref = coarse_extractor_reference(features, w, b)
    assert out_bottleneck.shape == (B, 256)
    # bf16 operands / f32 accumulation -> loosened tolerance vs f32 reference.
    assert jnp.allclose(out_bottleneck, ref, atol=1e-2, rtol=1e-2), (
        float(jnp.max(jnp.abs(out_bottleneck - ref))))

    print("KERNEL_OK")
</pallas_src>

<mosaic_0001>
module attributes {stable_mosaic.version = 11 : i64} {
  func.func @_coarse_extractor_kernel(%arg0: i32, %arg1: memref<16x2048xbf16, #tpu.memory_space<vmem>>, %arg2: memref<2048x256xbf16, #tpu.memory_space<vmem>>, %arg3: memref<1x256xf32, #tpu.memory_space<vmem>>, %arg4: memref<16x256xf32, #tpu.memory_space<vmem>>) attributes {dimension_semantics = [#tpu.dimension_semantics<parallel>], iteration_bounds = array<i64: 1>, scalar_prefetch = 0 : i64, scratch_operands = 0 : i64, tpu.core_type = #tpu.core_type<tc>, window_params = [{transform_indices = @transform_0, window_bounds = array<i64: 16, 2048>}, {pipeline_mode = #tpu.pipeline_mode<synchronous>, transform_indices = @transform_1, window_bounds = array<i64: 2048, 256>}, {pipeline_mode = #tpu.pipeline_mode<synchronous>, transform_indices = @transform_2, window_bounds = array<i64: 1, 256>}, {transform_indices = @transform_3, window_bounds = array<i64: 16, 256>}]} {
    %c0 = arith.constant 0 : index
    %c0_0 = arith.constant 0 : index
    %0 = vector.load %arg1[%c0, %c0_0] : memref<16x2048xbf16, #tpu.memory_space<vmem>>, vector<16x2048xbf16>
    %c0_1 = arith.constant 0 : index
    %c0_2 = arith.constant 0 : index
    %1 = vector.load %arg2[%c0_1, %c0_2] : memref<2048x256xbf16, #tpu.memory_space<vmem>>, vector<2048x256xbf16>
    %cst = arith.constant dense<0.000000e+00> : vector<16x256xf32>
    %2 = tpu.matmul %0, %1, %cst {dimension_numbers = #tpu.dot_dimension_numbers<[1], [0], [0], [1], [0, 0, 1, 1], [], []>} : vector<16x2048xbf16>, vector<2048x256xbf16>, vector<16x256xf32> -> vector<16x256xf32>
    %c0_3 = arith.constant 0 : index
    %c0_4 = arith.constant 0 : index
    %3 = vector.load %arg3[%c0_3, %c0_4] : memref<1x256xf32, #tpu.memory_space<vmem>>, vector<1x256xf32>
    %4 = vector.broadcast %3 : vector<1x256xf32> to vector<16x256xf32>
    %5 = arith.addf %2, %4 : vector<16x256xf32>
    %cst_5 = arith.constant 0.000000e+00 : f32
    %6 = vector.broadcast %cst_5 : f32 to vector<16x256xf32>
    %7 = arith.maximumf %5, %6 : vector<16x256xf32>
    %c0_6 = arith.constant 0 : index
    %c0_7 = arith.constant 0 : index
    %8 = vector.load %arg4[%c0_6, %c0_7] : memref<16x256xf32, #tpu.memory_space<vmem>>, vector<16x256xf32>
    tpu.vector_store %arg4[%c0_6, %c0_7], %7 {strides = array<i32>} : memref<16x256xf32, #tpu.memory_space<vmem>>, vector<16x256xf32>,
    return
  }
  func.func @transform_0(%arg0: i32) -> (i32, i32) {
    %c0_i32 = arith.constant 0 : i32
    %c0_i32_0 = arith.constant 0 : i32
    return %arg0, %c0_i32 : i32, i32
  }
  func.func @transform_1(%arg0: i32) -> (i32, i32) {
    %c0_i32 = arith.constant 0 : i32
    %c0_i32_0 = arith.constant 0 : i32
    %c0_i32_1 = arith.constant 0 : i32
    return %c0_i32, %c0_i32_0 : i32, i32
  }
  func.func @transform_2(%arg0: i32) -> (i32, i32) {
    %c0_i32 = arith.constant 0 : i32
    %c0_i32_0 = arith.constant 0 : i32
    %c0_i32_1 = arith.constant 0 : i32
    return %c0_i32, %c0_i32_0 : i32, i32
  }
  func.func @transform_3(%arg0: i32) -> (i32, i32) {
    %c0_i32 = arith.constant 0 : i32
    %c0_i32_0 = arith.constant 0 : i32
    return %arg0, %c0_i32 : i32, i32
  }
}

</mosaic_0001>

<bundles_post_ra>
// kernel: tpu_custom_call.1
= control target key start
LH: loop header
LB: loop body
LE: loop exit
PB: predicated region body
PF: predicated region fallthrough
CT: control target
= control target key end

     0   :  { %8 = vsyncpa [#allocation3], 0  ;;  %s3796_s0 = inlined_call_operand.hbm [shape: bf16[16,2048], index: 0, kind: input, shape index: {}]   ;;  %s3797_s1 = inlined_call_operand.hbm [shape: bf16[2048,256], index: 1, kind: input, shape index: {}]   ;;  %s3798_s2 = inlined_call_operand.hbm [shape: f32[1,256], index: 2, kind: input, shape index: {}]   ;;  %s3799_s3 = inlined_call_operand.hbm [shape: f32[16,256], index: 3, kind: output, shape index: {}]  }
   0x1   :  { %9 = vsyncpa [#allocation6], 0  ;;  %s28_s14 = sshll.u32 %s3797_s1, 4  ;;  %s29_s14 = int_to_ptr.hbm [resolvable:$true] %s28_s14 }
   0x2   :  { %10 = vsyncpa [#allocation4], 0  ;;  %s3646_s15 = smov [#allocation5]   ;;  %s15_s19 = sshll.u32 %s3796_s0, 4  ;;  %s16_s19 = int_to_ptr.hbm [resolvable:$true] %s15_s19 }
   0x3   :  { %s30_s16 = sshll.u32 %s3646_s15, 4  ;;  %s3647_s20 = smov 128   ;;  %s31_s16 = int_to_ptr.vmem [resolvable:$true] %s30_s16 }
   0x4   :  { %s3648_s21 = smov 8   ;;  %s3649_s22 = smov [#allocation2]  }
   0x5   :  { %36 = dma.hbm_to_vmem [thread:$0]  %s29_s14, 32768, %s31_s16, [#allocation6], %s3647_s20, %s3647_s20, %s3648_s21  }
   0x6   :  { %s17_s23 = sshll.u32 %s3649_s22, 4  ;;  %s3650_s24 = smov 1024   ;;  %s18_s23 = int_to_ptr.vmem [resolvable:$true] %s17_s23 }
   0x7   :  { %s3651_s25 = smov 64   ;;  %s42_s27 = sshll.u32 %s3798_s2, 4  ;;  %s43_s27 = int_to_ptr.hbm [resolvable:$true] %s42_s27 }
   0x8   :  { %23 = dma.hbm_to_vmem [thread:$0]  %s16_s19, 2048, %s18_s23, [#allocation3], %s3650_s24, %s3650_s24, %s3651_s25  }
   0x9   :  { %s3652_s28 = smov [#allocation7]  }
   0xa   :  { %s44_s29 = sshll.u32 %s3652_s28, 4  ;;  %s45_s29 = int_to_ptr.vmem [resolvable:$true] %s44_s29 }
   0xb   :  { %47 = dma.hbm_to_vmem [thread:$0]  %s43_s27, 32, %s45_s29, [#allocation6]  }
   0xc   :  { %3640 = dma.done.wait [#allocation3], 2048  }
   0xd   :  { %3641 = vsyncadd [#allocation3], 4294965248 }
   0xe   :  { %3642 = dma.done.wait [#allocation6], 32800  }
   0xf   :  { %3643 = vsyncadd [#allocation6], 4294934496  ;;  %v2296_v0 = vld [vmem:[#allocation5 + $0x70] sm:$0xf]  ;;  %v3293_v1 = vld [vmem:[#allocation5 + $0x74] sm:$0xf0] }
  0x10   :  { %v2360_v2 = vld [vmem:[#allocation5 + $0xf0] sm:$0xf]  ;;  %v2297_v3 = vor.u32 %v3293_v1, %v2296_v0  ;;  %v3309_v4 = vld [vmem:[#allocation5 + $0xf4] sm:$0xf0]  ;;  %v2288_v11 = vld [vmem:[#allocation5 + $0x60] sm:$0xf] }
  0x11   :  { %v2424_v5 = vld [vmem:[#allocation5 + $0x170] sm:$0xf]  ;;  %v3325_v6 = vld [vmem:[#allocation5 + $0x174] sm:$0xf0]  ;;  %v2361_v7 = vor.u32 %v3309_v4, %v2360_v2  ;;  %v3291_v13 = vld [vmem:[#allocation5 + $0x64] sm:$0xf0] }
  0x12   :  { %v2425_v8 = vor.u32 %v3325_v6, %v2424_v5  ;;  %v2488_v9 = vld [vmem:[#allocation5 + $0x1f0] sm:$0xf]  ;;  %v3341_v10 = vld [vmem:[#allocation5 + $0x1f4] sm:$0xf0]  ;;  %1698 = vmatpush.bf16.msra.mxu0 %v2297_v3  ;;  %v2352_v14 = vld [vmem:[#allocation5 + $0xe0] sm:$0xf]  ;;  %v2289_v16 = vor.u32 %v3291_v13, %v2288_v11 }
  0x13   :  { %v2489_v12 = vor.u32 %v3341_v10, %v2488_v9  ;;  %v3307_v15 = vld [vmem:[#allocation5 + $0xe4] sm:$0xf0]  ;;  %1712 = vmatpush.bf16.msra.mxu1 %v2361_v7  ;;  %v2416_v18 = vld [vmem:[#allocation5 + $0x160] sm:$0xf]  ;;  %v2280_v23 = vld [vmem:[#allocation5 + $0x50] sm:$0xf] }
  0x14   :  { %1726 = vmatpush.bf16.msra.mxu2 %v2425_v8  ;;  %v2353_v17 = vor.u32 %v3307_v15, %v2352_v14  ;;  %v3323_v19 = vld [vmem:[#allocation5 + $0x164] sm:$0xf0]  ;;  %v2480_v20 = vld [vmem:[#allocation5 + $0x1e0] sm:$0xf]  ;;  %v3289_v24 = vld [vmem:[#allocation5 + $0x54] sm:$0xf0] }
  0x15   :  { %1740 = vmatpush.bf16.msra.mxu3 %v2489_v12  ;;  %v2417_v21 = vor.u32 %v3323_v19, %v2416_v18  ;;  %v3339_v22 = vld [vmem:[#allocation5 + $0x1e4] sm:$0xf0]  ;;  %v2344_v26 = vld [vmem:[#allocation5 + $0xd0] sm:$0xf]  ;;  %v3305_v27 = vld [vmem:[#allocation5 + $0xd4] sm:$0xf0]  ;;  %v2281_v29 = vor.u32 %v3289_v24, %v2280_v23 }
  0x16   :  { %v2481_v25 = vor.u32 %v3339_v22, %v2480_v20  ;;  %v2408_v28 = vld [vmem:[#allocation5 + $0x150] sm:$0xf]  ;;  %1699 = vmatpush.bf16.msra.mxu0 %v2289_v16  ;;  %v3321_v30 = vld [vmem:[#allocation5 + $0x154] sm:$0xf0]  ;;  %v2345_v33 = vor.u32 %v3305_v27, %v2344_v26  ;;  %v2272_v35 = vld [vmem:[#allocation5 + $0x40] sm:$0xf] }
  0x17   :  { %v2472_v31 = vld [vmem:[#allocation5 + $0x1d0] sm:$0xf]  ;;  %v3337_v32 = vld [vmem:[#allocation5 + $0x1d4] sm:$0xf0]  ;;  %1713 = vmatpush.bf16.msra.mxu1 %v2353_v17  ;;  %v2409_v34 = vor.u32 %v3321_v30, %v2408_v28  ;;  %v3287_v36 = vld [vmem:[#allocation5 + $0x44] sm:$0xf0] }
  0x18   :  { %1727 = vmatpush.bf16.msra.mxu2 %v2417_v21  ;;  %v2336_v37 = vld [vmem:[#allocation5 + $0xc0] sm:$0xf]  ;;  %v2473_v38 = vor.u32 %v3337_v32, %v2472_v31  ;;  %v3303_v39 = vld [vmem:[#allocation5 + $0xc4] sm:$0xf0]  ;;  %v2273_v44 = vor.u32 %v3287_v36, %v2272_v35  ;;  %v2264_v47 = vld [vmem:[#allocation5 + $0x30] sm:$0xf] }
  0x19   :  { %1741 = vmatpush.bf16.msra.mxu3 %v2481_v25  ;;  %v2400_v40 = vld [vmem:[#allocation5 + $0x140] sm:$0xf]  ;;  %v3319_v41 = vld [vmem:[#allocation5 + $0x144] sm:$0xf0]  ;;  %v2337_v45 = vor.u32 %v3303_v39, %v2336_v37  ;;  %v3285_v48 = vld [vmem:[#allocation5 + $0x34] sm:$0xf0] }
  0x1a   :  { %v2464_v42 = vld [vmem:[#allocation5 + $0x1c0] sm:$0xf]  ;;  %v3335_v43 = vld [vmem:[#allocation5 + $0x1c4] sm:$0xf0]  ;;  %1700 = vmatpush.bf16.msra.mxu0 %v2281_v29  ;;  %v2401_v46 = vor.u32 %v3319_v41, %v2400_v40  ;;  %v2328_v49 = vld [vmem:[#allocation5 + $0xb0] sm:$0xf]  ;;  %v2265_v56 = vor.u32 %v3285_v48, %v2264_v47 }
  0x1b   :  { %1714 = vmatpush.bf16.msra.mxu1 %v2345_v33  ;;  %v2465_v50 = vor.u32 %v3335_v43, %v2464_v42  ;;  %v3301_v51 = vld [vmem:[#allocation5 + $0xb4] sm:$0xf0]  ;;  %v2392_v52 = vld [vmem:[#allocation5 + $0x130] sm:$0xf]  ;;  %v2256_v59 = vld [vmem:[#allocation5 + $0x20] sm:$0xf] }
  0x1c   :  { %1728 = vmatpush.bf16.msra.mxu2 %v2409_v34  ;;  %v3317_v53 = vld [vmem:[#allocation5 + $0x134] sm:$0xf0]  ;;  %v2456_v54 = vld [vmem:[#allocation5 + $0x1b0] sm:$0xf]  ;;  %v2329_v57 = vor.u32 %v3301_v51, %v2328_v49  ;;  %v3283_v60 = vld [vmem:[#allocation5 + $0x24] sm:$0xf0] }
  0x1d   :  { %1742 = vmatpush.bf16.msra.mxu3 %v2473_v38  ;;  %v3333_v55 = vld [vmem:[#allocation5 + $0x1b4] sm:$0xf0]  ;;  %v2393_v58 = vor.u32 %v3317_v53, %v2392_v52  ;;  %v2320_v61 = vld [vmem:[#allocation5 + $0xa0] sm:$0xf]  ;;  %v3299_v63 = vld [vmem:[#allocation5 + $0xa4] sm:$0xf0]  ;;  %v2257_v4 = vor.u32 %v3283_v60, %v2256_v59 }
  0x1e   :  { %1701 = vmatpush.bf16.msra.mxu0 %v2273_v44  ;;  %v2457_v62 = vor.u32 %v3333_v55, %v2456_v54  ;;  %v2384_v0 = vld [vmem:[#allocation5 + $0x120] sm:$0xf]  ;;  %v3315_v1 = vld [vmem:[#allocation5 + $0x124] sm:$0xf0]  ;;  %v2321_v5 = vor.u32 %v3299_v63, %v2320_v61  ;;  %v2248_v7 = vld [vmem:[#allocation5 + $0x10] sm:$0xf] }
  0x1f   :  { %1715 = vmatpush.bf16.msra.mxu1 %v2337_v45  ;;  %v2448_v2 = vld [vmem:[#allocation5 + $0x1a0] sm:$0xf]  ;;  %v3331_v3 = vld [vmem:[#allocation5 + $0x1a4] sm:$0xf0]  ;;  %v2385_v6 = vor.u32 %v3315_v1, %v2384_v0  ;;  %v3281_v8 = vld [vmem:[#allocation5 + $0x14] sm:$0xf0] }
  0x20   :  { %1729 = vmatpush.bf16.msra.mxu2 %v2401_v46  ;;  %v2312_v9 = vld [vmem:[#allocation5 + $0x90] sm:$0xf]  ;;  %v2449_v10 = vor.u32 %v3331_v3, %v2448_v2  ;;  %v3297_v11 = vld [vmem:[#allocation5 + $0x94] sm:$0xf0]  ;;  %v2249_v16 = vor.u32 %v3281_v8, %v2248_v7  ;;  %v2240_v17 = vld [vmem:[#allocation5] sm:$0xf] }
  0x21   :  { %1743 = vmatpush.bf16.msra.mxu3 %v2465_v50  ;;  %v2376_v12 = vld [vmem:[#allocation5 + $0x110] sm:$0xf]  ;;  %v3313_v13 = vld [vmem:[#allocation5 + $0x114] sm:$0xf0]  ;;  %v3279_v18 = vld [vmem:[#allocation5 + $0x4] sm:$0xf0]  ;;  %v2313_v19 = vor.u32 %v3297_v11, %v2312_v9 }
  0x22   :  { %1702 = vmatpush.bf16.msra.mxu0 %v2265_v56  ;;  %v2440_v14 = vld [vmem:[#allocation5 + $0x190] sm:$0xf]  ;;  %v3329_v15 = vld [vmem:[#allocation5 + $0x194] sm:$0xf0]  ;;  %v2377_v20 = vor.u32 %v3313_v13, %v2376_v12  ;;  %v2304_v21 = vld [vmem:[#allocation5 + $0x80] sm:$0xf]  ;;  %v2241_v31 = vor.u32 %v3279_v18, %v2240_v17 }
  0x23   :  { %1716 = vmatpush.bf16.msra.mxu1 %v2329_v57  ;;  %v3295_v22 = vld [vmem:[#allocation5 + $0x84] sm:$0xf0]  ;;  %v2368_v23 = vld [vmem:[#allocation5 + $0x100] sm:$0xf]  ;;  %v2441_v24 = vor.u32 %v3329_v15, %v2440_v14  ;;  %v2552_v28 = vld [vmem:[#allocation5 + $0x270] sm:$0xf] }
  0x24   :  { %1730 = vmatpush.bf16.msra.mxu2 %v2393_v58  ;;  %v3311_v25 = vld [vmem:[#allocation5 + $0x104] sm:$0xf0]  ;;  %v2432_v26 = vld [vmem:[#allocation5 + $0x180] sm:$0xf]  ;;  %v3357_v29 = vld [vmem:[#allocation5 + $0x274] sm:$0xf0]  ;;  %v2305_v35 = vor.u32 %v3295_v22, %v2304_v21 }
  0x25   :  { %1744 = vmatpush.bf16.msra.mxu3 %v2457_v62  ;;  %v3327_v27 = vld [vmem:[#allocation5 + $0x184] sm:$0xf0]  ;;  %v2616_v30 = vld [vmem:[#allocation5 + $0x2f0] sm:$0xf]  ;;  %v3373_v32 = vld [vmem:[#allocation5 + $0x2f4] sm:$0xf0]  ;;  %v2369_v36 = vor.u32 %v3311_v25, %v2368_v23  ;;  %v2553_v40 = vor.u32 %v3357_v29, %v2552_v28 }
  0x26   :  { %1703 = vmatpush.bf16.msra.mxu0 %v2257_v4  ;;  %v2680_v33 = vld [vmem:[#allocation5 + $0x370] sm:$0xf]  ;;  %v3389_v34 = vld [vmem:[#allocation5 + $0x374] sm:$0xf0]  ;;  %v2433_v39 = vor.u32 %v3327_v27, %v2432_v26  ;;  %v2544_v41 = vld [vmem:[#allocation5 + $0x260] sm:$0xf]  ;;  %v2617_v43 = vor.u32 %v3373_v32, %v2616_v30 }
  0x27   :  { %1717 = vmatpush.bf16.msra.mxu1 %v2321_v5  ;;  %v2744_v37 = vld [vmem:[#allocation5 + $0x3f0] sm:$0xf]  ;;  %v3405_v38 = vld [vmem:[#allocation5 + $0x3f4] sm:$0xf0]  ;;  %v3355_v42 = vld [vmem:[#allocation5 + $0x264] sm:$0xf0]  ;;  %v2681_v44 = vor.u32 %v3389_v34, %v2680_v33 }
  0x28   :  { %1731 = vmatpush.bf16.msra.mxu2 %v2385_v6  ;;  %v2608_v45 = vld [vmem:[#allocation5 + $0x2e0] sm:$0xf]  ;;  %v3371_v46 = vld [vmem:[#allocation5 + $0x2e4] sm:$0xf0]  ;;  %v2745_v48 = vor.u32 %v3405_v38, %v2744_v37  ;;  %v2545_v55 = vor.u32 %v3355_v42, %v2544_v41  ;;  %v2536_v56 = vld [vmem:[#allocation5 + $0x250] sm:$0xf] }
  0x29   :  { %1745 = vmatpush.bf16.msra.mxu3 %v2449_v10  ;;  %v2672_v47 = vld [vmem:[#allocation5 + $0x360] sm:$0xf]  ;;  %v3387_v49 = vld [vmem:[#allocation5 + $0x364] sm:$0xf0]  ;;  %v3353_v57 = vld [vmem:[#allocation5 + $0x254] sm:$0xf0]  ;;  %v2609_v60 = vor.u32 %v3371_v46, %v2608_v45 }
  0x2a   :  { %1704 = vmatpush.bf16.msra.mxu0 %v2249_v16  ;;  %v2736_v50 = vld [vmem:[#allocation5 + $0x3e0] sm:$0xf]  ;;  %v3403_v51 = vld [vmem:[#allocation5 + $0x3e4] sm:$0xf0]  ;;  %v2673_v61 = vor.u32 %v3387_v49, %v2672_v47  ;;  %v2600_v62 = vld [vmem:[#allocation5 + $0x2d0] sm:$0xf]  ;;  %v2537_v9 = vor.u32 %v3353_v57, %v2536_v56 }
  0x2b   :  { %1718 = vmatpush.bf16.msra.mxu1 %v2313_v19  ;;  %v2176_v52 = vld [vmem:[#allocation2] sm:$0xf]  ;;  %v2184_v54 = vld [vmem:[#allocation2 + $0x8] sm:$0xf]  ;;  %v3369_v63 = vld [vmem:[#allocation5 + $0x2d4] sm:$0xf0]  ;;  %v2737_v2 = vor.u32 %v3403_v51, %v2736_v50 }
  0x2c   :  { %1732 = vmatpush.bf16.msra.mxu2 %v2377_v20  ;;  %v3270_v53 = vld [vmem:[#allocation2 + $0x3c] sm:$0xf0]  ;;  %v3271_v59 = vld [vmem:[#allocation2 + $0x44] sm:$0xf0]  ;;  %v2664_v0 = vld [vmem:[#allocation5 + $0x350] sm:$0xf]  ;;  %v2601_v12 = vor.u32 %v3369_v63, %v2600_v62 }
  0x2d   :  { %1746 = vmatpush.bf16.msra.mxu3 %v2441_v24  ;;  %v3685_v58 = vor.u32 %v3270_v53, %v2176_v52  ;;  %v3687_v1 = vor.u32 %v3271_v59, %v2184_v54  ;;  %v3385_v3 = vld [vmem:[#allocation5 + $0x354] sm:$0xf0]  ;;  %v2728_v4 = vld [vmem:[#allocation5 + $0x3d0] sm:$0xf]  ;;  %v3262_v6 = vld [vmem:[#allocation2 + $0x4] sm:$0xf] }
  0x2e   :  { %1705 = vmatpush.bf16.msra.mxu0 %v2241_v31  ;;  %v3401_v5 = vld [vmem:[#allocation5 + $0x3d4] sm:$0xf0]  ;;  %v2178_v7 = vld [vmem:[#allocation2 + $0x40] sm:$0xf0]  ;;  %v3263_v8 = vld [vmem:[#allocation2 + $0xc] sm:$0xf]  ;;  %v2665_v13 = vor.u32 %v3385_v3, %v2664_v0 }
  0x2f   :  { %1719 = vmatpush.bf16.msra.mxu1 %v2305_v35  ;;  %v3691_v10 = vor.u32 %v3262_v6, %v2178_v7  ;;  %v2186_v11 = vld [vmem:[#allocation2 + $0x48] sm:$0xf0]  ;;  %v2528_v14 = vld [vmem:[#allocation5 + $0x240] sm:$0xf]  ;;  %v3351_v15 = vld [vmem:[#allocation5 + $0x244] sm:$0xf0]  ;;  %v2729_v18 = vor.u32 %v3401_v5, %v2728_v4 }
  0x30   :  { %1733 = vmatpush.bf16.msra.mxu2 %v2369_v36  ;;  %v2592_v16 = vld [vmem:[#allocation5 + $0x2c0] sm:$0xf]  ;;  %v3693_v17 = vor.u32 %v3263_v8, %v2186_v11  ;;  %v3367_v19 = vld [vmem:[#allocation5 + $0x2c4] sm:$0xf0]  ;;  %v2529_v24 = vor.u32 %v3351_v15, %v2528_v14  ;;  %v2520_v27 = vld [vmem:[#allocation5 + $0x230] sm:$0xf] }
  0x31   :  { %1747 = vmatpush.bf16.msra.mxu3 %v2433_v39  ;;  %1706 = vmatmul.bf16.vlgmr.msra.gmra.mxu0 %v3685_v58  ;;  %v2656_v20 = vld [vmem:[#allocation5 + $0x340] sm:$0xf]  ;;  %v3383_v21 = vld [vmem:[#allocation5 + $0x344] sm:$0xf0]  ;;  %v2593_v25 = vor.u32 %v3367_v19, %v2592_v16  ;;  %v3349_v28 = vld [vmem:[#allocation5 + $0x234] sm:$0xf0] }
  0x32   :  { %1754 = vmatpush.bf16.msrb.mxu0 %v2553_v40  ;;  %1720 = vmatmul.bf16.vlgmr.msra.gmra.mxu1 %v3691_v10  ;;  %v2720_v22 = vld [vmem:[#allocation5 + $0x3c0] sm:$0xf]  ;;  %v3399_v23 = vld [vmem:[#allocation5 + $0x3c4] sm:$0xf0]  ;;  %v2657_v26 = vor.u32 %v3383_v21, %v2656_v20  ;;  %v2584_v29 = vld [vmem:[#allocation5 + $0x2b0] sm:$0xf]  ;;  %v2521_v36 = vor.u32 %v3349_v28, %v2520_v27 }
  0x33   :  { %1768 = vmatpush.bf16.msrb.mxu1 %v2617_v43  ;;  %1734 = vmatmul.bf16.vlgmr.msra.gmra.mxu2 %v3687_v1  ;;  %v2721_v30 = vor.u32 %v3399_v23, %v2720_v22  ;;  %v3365_v31 = vld [vmem:[#allocation5 + $0x2b4] sm:$0xf0]  ;;  %v2648_v32 = vld [vmem:[#allocation5 + $0x330] sm:$0xf]  ;;  %v2512_v39 = vld [vmem:[#allocation5 + $0x220] sm:$0xf] }
  0x34   :  { %1782 = vmatpush.bf16.msrb.mxu2 %v2681_v44  ;;  %1748 = vmatmul.bf16.vlgmr.msra.gmra.mxu3 %v3693_v17  ;;  %v3381_v33 = vld [vmem:[#allocation5 + $0x334] sm:$0xf0]  ;;  %v2712_v34 = vld [vmem:[#allocation5 + $0x3b0] sm:$0xf]  ;;  %v2585_v37 = vor.u32 %v3365_v31, %v2584_v29  ;;  %v3347_v40 = vld [vmem:[#allocation5 + $0x224] sm:$0xf0] }
  0x35   :  { %1796 = vmatpush.bf16.msrb.mxu3 %v2745_v48  ;;  %v3397_v35 = vld [vmem:[#allocation5 + $0x3b4] sm:$0xf0]  ;;  %v2649_v38 = vor.u32 %v3381_v33, %v2648_v32  ;;  %v2576_v41 = vld [vmem:[#allocation5 + $0x2a0] sm:$0xf]  ;;  %v3363_v43 = vld [vmem:[#allocation5 + $0x2a4] sm:$0xf0]  ;;  %v2513_v48 = vor.u32 %v3347_v40, %v2512_v39 }
  0x36   :  { %1755 = vmatpush.bf16.msrb.mxu0 %v2545_v55  ;;  %v2713_v42 = vor.u32 %v3397_v35, %v2712_v34  ;;  %v2640_v44 = vld [vmem:[#allocation5 + $0x320] sm:$0xf]  ;;  %v3379_v45 = vld [vmem:[#allocation5 + $0x324] sm:$0xf0]  ;;  %v2504_v49 = vld [vmem:[#allocation5 + $0x210] sm:$0xf]  ;;  %v2577_v50 = vor.u32 %v3363_v43, %v2576_v41 }
  0x37   :  { %1769 = vmatpush.bf16.msrb.mxu1 %v2609_v60  ;;  %v2704_v46 = vld [vmem:[#allocation5 + $0x3a0] sm:$0xf]  ;;  %v3395_v47 = vld [vmem:[#allocation5 + $0x3a4] sm:$0xf0]  ;;  %v2641_v51 = vor.u32 %v3379_v45, %v2640_v44  ;;  %v3345_v52 = vld [vmem:[#allocation5 + $0x214] sm:$0xf0] }
  0x38   :  { %1783 = vmatpush.bf16.msrb.mxu2 %v2673_v61  ;;  %v2568_v53 = vld [vmem:[#allocation5 + $0x290] sm:$0xf]  ;;  %v3361_v54 = vld [vmem:[#allocation5 + $0x294] sm:$0xf0]  ;;  %v2705_v55 = vor.u32 %v3395_v47, %v2704_v46  ;;  %v2496_v61 = vld [vmem:[#allocation5 + $0x200] sm:$0xf]  ;;  %v2505_v63 = vor.u32 %v3345_v52, %v2504_v49 }
  0x39   :  { %1797 = vmatpush.bf16.msrb.mxu3 %v2737_v2  ;;  %v2632_v56 = vld [vmem:[#allocation5 + $0x310] sm:$0xf]  ;;  %v3377_v57 = vld [vmem:[#allocation5 + $0x314] sm:$0xf0]  ;;  %v3343_v62 = vld [vmem:[#allocation5 + $0x204] sm:$0xf0]  ;;  %v2569_v5 = vor.u32 %v3361_v54, %v2568_v53 }
  0x3a   :  { %1756 = vmatpush.bf16.msrb.mxu0 %v2537_v9  ;;  %v2696_v59 = vld [vmem:[#allocation5 + $0x390] sm:$0xf]  ;;  %v3393_v60 = vld [vmem:[#allocation5 + $0x394] sm:$0xf0]  ;;  %v2560_v0 = vld [vmem:[#allocation5 + $0x280] sm:$0xf]  ;;  %v2633_v6 = vor.u32 %v3377_v57, %v2632_v56  ;;  %v2497_v19 = vor.u32 %v3343_v62, %v2496_v61 }
  0x3b   :  { %1770 = vmatpush.bf16.msrb.mxu1 %v2601_v12  ;;  %v3359_v2 = vld [vmem:[#allocation5 + $0x284] sm:$0xf0]  ;;  %v2624_v3 = vld [vmem:[#allocation5 + $0x300] sm:$0xf]  ;;  %v2808_v9 = vld [vmem:[#allocation5 + $0x470] sm:$0xf]  ;;  %v2697_v11 = vor.u32 %v3393_v60, %v2696_v59 }
  0x3c   :  { %1784 = vmatpush.bf16.msrb.mxu2 %v2665_v13  ;;  %v3375_v4 = vld [vmem:[#allocation5 + $0x304] sm:$0xf0]  ;;  %v2688_v7 = vld [vmem:[#allocation5 + $0x380] sm:$0xf]  ;;  %v3421_v12 = vld [vmem:[#allocation5 + $0x474] sm:$0xf0]  ;;  %v2561_v23 = vor.u32 %v3359_v2, %v2560_v0 }
  0x3d   :  { %1798 = vmatpush.bf16.msrb.mxu3 %v2729_v18  ;;  %v3391_v8 = vld [vmem:[#allocation5 + $0x384] sm:$0xf0]  ;;  %v2872_v13 = vld [vmem:[#allocation5 + $0x4f0] sm:$0xf]  ;;  %v3437_v14 = vld [vmem:[#allocation5 + $0x4f4] sm:$0xf0]  ;;  %v2809_v29 = vor.u32 %v3421_v12, %v2808_v9 }
  0x3e   :  { %1757 = vmatpush.bf16.msrb.mxu0 %v2529_v24  ;;  %v2936_v15 = vld [vmem:[#allocation5 + $0x570] sm:$0xf]  ;;  %v3453_v16 = vld [vmem:[#allocation5 + $0x574] sm:$0xf0]  ;;  %v2625_v24 = vor.u32 %v3375_v4, %v2624_v3  ;;  %v3264_v27 = vld [vmem:[#allocation2 + $0x14] sm:$0xf]  ;;  %v2689_v28 = vor.u32 %v3391_v8, %v2688_v7  ;;  %v2873_v33 = vor.u32 %v3437_v14, %v2872_v13 }
  0x3f   :  { %1771 = vmatpush.bf16.msrb.mxu1 %v2593_v25  ;;  %v3000_v18 = vld [vmem:[#allocation5 + $0x5f0] sm:$0xf]  ;;  %v3469_v20 = vld [vmem:[#allocation5 + $0x5f4] sm:$0xf0]  ;;  %v3265_v31 = vld [vmem:[#allocation2 + $0x1c] sm:$0xf]  ;;  %v2937_v34 = vor.u32 %v3453_v16, %v2936_v15 }
  0x40   :  { %1785 = vmatpush.bf16.msrb.mxu2 %v2657_v26  ;;  %v2192_v21 = vld [vmem:[#allocation2 + $0x10] sm:$0xf]  ;;  %v2200_v25 = vld [vmem:[#allocation2 + $0x18] sm:$0xf]  ;;  %v2202_v32 = vld [vmem:[#allocation2 + $0x58] sm:$0xf0] }
  0x41   :  { %1799 = vmatpush.bf16.msrb.mxu3 %v2721_v30  ;;  %v3272_v22 = vld [vmem:[#allocation2 + $0x4c] sm:$0xf0]  ;;  %v3273_v26 = vld [vmem:[#allocation2 + $0x54] sm:$0xf0]  ;;  %v2194_v30 = vld [vmem:[#allocation2 + $0x50] sm:$0xf0]  ;;  %v3703_v47 = vor.u32 %v3265_v31, %v2202_v32 }
  0x42   :  { %1758 = vmatpush.bf16.msrb.mxu0 %v2521_v36  ;;  %v2800_v35 = vld [vmem:[#allocation5 + $0x460] sm:$0xf]  ;;  %v3419_v36 = vld [vmem:[#allocation5 + $0x464] sm:$0xf0]  ;;  %v3697_v39 = vor.u32 %v3272_v22, %v2192_v21  ;;  %v3699_v43 = vor.u32 %v3273_v26, %v2200_v25  ;;  %v3701_v44 = vor.u32 %v3264_v27, %v2194_v30  ;;  %v3417_v52 = vld [vmem:[#allocation5 + $0x454] sm:$0xf0] }
  0x43   :  { %1772 = vmatpush.bf16.msrb.mxu1 %v2585_v37  ;;  %v2864_v37 = vld [vmem:[#allocation5 + $0x4e0] sm:$0xf]  ;;  %v3435_v40 = vld [vmem:[#allocation5 + $0x4e4] sm:$0xf0]  ;;  %v2856_v53 = vld [vmem:[#allocation5 + $0x4d0] sm:$0xf] }
  0x44   :  { %1786 = vmatpush.bf16.msrb.mxu2 %v2649_v38  ;;  %v3001_v38 = vor.u32 %v3469_v20, %v3000_v18  ;;  %v2928_v41 = vld [vmem:[#allocation5 + $0x560] sm:$0xf]  ;;  %v3467_v46 = vld [vmem:[#allocation5 + $0x5e4] sm:$0xf0]  ;;  %v2865_v49 = vor.u32 %v3435_v40, %v2864_v37  ;;  %v2920_v56 = vld [vmem:[#allocation5 + $0x550] sm:$0xf] }
  0x45   :  { %1800 = vmatpush.bf16.msrb.mxu3 %v2713_v42  ;;  %v3451_v42 = vld [vmem:[#allocation5 + $0x564] sm:$0xf0]  ;;  %v2992_v45 = vld [vmem:[#allocation5 + $0x5e0] sm:$0xf]  ;;  %v3449_v57 = vld [vmem:[#allocation5 + $0x554] sm:$0xf0] }
  0x46   :  { %1759 = vmatpush.bf16.msrb.mxu0 %v2513_v48  ;;  %v2801_v48 = vor.u32 %v3419_v36, %v2800_v35  ;;  %v2993_v54 = vor.u32 %v3467_v46, %v2992_v45  ;;  %v2984_v59 = vld [vmem:[#allocation5 + $0x5d0] sm:$0xf]  ;;  %v3465_v60 = vld [vmem:[#allocation5 + $0x5d4] sm:$0xf0]  ;;  %v2784_v0 = vld [vmem:[#allocation5 + $0x440] sm:$0xf] }
  0x47   :  { %1773 = vmatpush.bf16.msrb.mxu1 %v2577_v50  ;;  %v2929_v50 = vor.u32 %v3451_v42, %v2928_v41  ;;  %v3415_v2 = vld [vmem:[#allocation5 + $0x444] sm:$0xf0]  ;;  %v2848_v3 = vld [vmem:[#allocation5 + $0x4c0] sm:$0xf]  ;;  %v2985_v4 = vor.u32 %v3465_v60, %v2984_v59  ;;  %v2776_v14 = vld [vmem:[#allocation5 + $0x430] sm:$0xf] }
  0x48   :  { %1787 = vmatpush.bf16.msrb.mxu2 %v2641_v51  ;;  %v2792_v51 = vld [vmem:[#allocation5 + $0x450] sm:$0xf]  ;;  %v3447_v7 = vld [vmem:[#allocation5 + $0x544] sm:$0xf0]  ;;  %v2976_v8 = vld [vmem:[#allocation5 + $0x5c0] sm:$0xf] }
  0x49   :  { %1801 = vmatpush.bf16.msrb.mxu3 %v2705_v55  ;;  %v3433_v55 = vld [vmem:[#allocation5 + $0x4d4] sm:$0xf0]  ;;  %v2793_v61 = vor.u32 %v3417_v52, %v2792_v51  ;;  %v3463_v9 = vld [vmem:[#allocation5 + $0x5c4] sm:$0xf0]  ;;  %v2840_v16 = vld [vmem:[#allocation5 + $0x4b0] sm:$0xf] }
  0x4a   :  { %1760 = vmatpush.bf16.msrb.mxu0 %v2505_v63  ;;  %v2857_v62 = vor.u32 %v3433_v55, %v2856_v53  ;;  %v2921_v63 = vor.u32 %v3449_v57, %v2920_v56  ;;  %v3413_v15 = vld [vmem:[#allocation5 + $0x434] sm:$0xf0]  ;;  %v2977_v18 = vor.u32 %v3463_v9, %v2976_v8  ;;  %v2904_v20 = vld [vmem:[#allocation5 + $0x530] sm:$0xf]  ;;  %v2768_v27 = vld [vmem:[#allocation5 + $0x420] sm:$0xf] }
  0x4b   :  { %1774 = vmatpush.bf16.msrb.mxu1 %v2569_v5  ;;  %v3431_v5 = vld [vmem:[#allocation5 + $0x4c4] sm:$0xf0]  ;;  %v3445_v21 = vld [vmem:[#allocation5 + $0x534] sm:$0xf0]  ;;  %v2968_v22 = vld [vmem:[#allocation5 + $0x5b0] sm:$0xf] }
  0x4c   :  { %1788 = vmatpush.bf16.msrb.mxu2 %v2633_v6  ;;  %v2912_v6 = vld [vmem:[#allocation5 + $0x540] sm:$0xf]  ;;  %v2849_v12 = vor.u32 %v3431_v5, %v2848_v3  ;;  %v2905_v26 = vor.u32 %v3445_v21, %v2904_v20  ;;  %v3427_v31 = vld [vmem:[#allocation5 + $0x4a4] sm:$0xf0]  ;;  %v2760_v37 = vld [vmem:[#allocation5 + $0x410] sm:$0xf] }
  0x4d   :  { %1802 = vmatpush.bf16.msrb.mxu3 %v2697_v11  ;;  %v2785_v11 = vor.u32 %v3415_v2, %v2784_v0  ;;  %v2913_v13 = vor.u32 %v3447_v7, %v2912_v6  ;;  %v2896_v32 = vld [vmem:[#allocation5 + $0x520] sm:$0xf]  ;;  %v3459_v35 = vld [vmem:[#allocation5 + $0x5a4] sm:$0xf0]  ;;  %v3409_v41 = vld [vmem:[#allocation5 + $0x414] sm:$0xf0] }
  0x4e   :  { %1761 = vmatpush.bf16.msrb.mxu0 %v2497_v19  ;;  %v3429_v19 = vld [vmem:[#allocation5 + $0x4b4] sm:$0xf0]  ;;  %v2824_v42 = vld [vmem:[#allocation5 + $0x490] sm:$0xf]  ;;  %v2752_v52 = vld [vmem:[#allocation5 + $0x400] sm:$0xf] }
  0x4f   :  { %1775 = vmatpush.bf16.msrb.mxu1 %v2561_v23  ;;  %v3461_v23 = vld [vmem:[#allocation5 + $0x5b4] sm:$0xf0]  ;;  %v2841_v25 = vor.u32 %v3429_v19, %v2840_v16  ;;  %v3407_v53 = vld [vmem:[#allocation5 + $0x404] sm:$0xf0]  ;;  %v2816_v55 = vld [vmem:[#allocation5 + $0x480] sm:$0xf] }
  0x50   :  { %1789 = vmatpush.bf16.msrb.mxu2 %v2625_v24  ;;  %v2777_v24 = vor.u32 %v3413_v15, %v2776_v14  ;;  %v2969_v30 = vor.u32 %v3461_v23, %v2968_v22  ;;  %v3425_v45 = vld [vmem:[#allocation5 + $0x494] sm:$0xf0]  ;;  %v3423_v56 = vld [vmem:[#allocation5 + $0x484] sm:$0xf0]  ;;  %v2880_v57 = vld [vmem:[#allocation5 + $0x500] sm:$0xf]  ;;  %v2753_v9 = vor.u32 %v3407_v53, %v2752_v52 }
  0x51   :  { %1803 = vmatpush.bf16.msrb.mxu3 %v2689_v28  ;;  %1762 = vmatmul.bf16.vlgmr.msrb.gmra.mxu0 %v3697_v39  ;;  %v3411_v28 = vld [vmem:[#allocation5 + $0x424] sm:$0xf0]  ;;  %v3457_v51 = vld [vmem:[#allocation5 + $0x594] sm:$0xf0]  ;;  %v2825_v60 = vor.u32 %v3425_v45, %v2824_v42  ;;  %v3064_v0 = vld [vmem:[#allocation5 + $0x670] sm:$0xf]  ;;  %v2817_v14 = vor.u32 %v3423_v56, %v2816_v55 }
  0x52   :  { %1810 = vmatpush.bf16.msra.mxu0 %v2809_v29  ;;  %1776 = vmatmul.bf16.vlgmr.msrb.gmra.mxu1 %v3701_v44  ;;  %v2832_v29 = vld [vmem:[#allocation5 + $0x4a0] sm:$0xf]  ;;  %v2769_v36 = vor.u32 %v3411_v28, %v2768_v27  ;;  %v3439_v59 = vld [vmem:[#allocation5 + $0x504] sm:$0xf0]  ;;  %v3485_v3 = vld [vmem:[#allocation5 + $0x674] sm:$0xf0] }
  0x53   :  { %1824 = vmatpush.bf16.msra.mxu1 %v2873_v33  ;;  %1790 = vmatmul.bf16.vlgmr.msrb.gmra.mxu2 %v3699_v43  ;;  %v3443_v33 = vld [vmem:[#allocation5 + $0x524] sm:$0xf0]  ;;  %v3501_v5 = vld [vmem:[#allocation5 + $0x6f4] sm:$0xf0]  ;;  %v3192_v6 = vld [vmem:[#allocation5 + $0x770] sm:$0xf]  ;;  %v2881_v15 = vor.u32 %v3439_v59, %v2880_v57  ;;  %v3065_v21 = vor.u32 %v3485_v3, %v3064_v0 }
  0x54   :  { %1838 = vmatpush.bf16.msra.mxu2 %v2937_v34  ;;  %1804 = vmatmul.bf16.vlgmr.msrb.gmra.mxu3 %v3703_v47  ;;  %v2960_v34 = vld [vmem:[#allocation5 + $0x5a0] sm:$0xf]  ;;  %v2897_v40 = vor.u32 %v3443_v33, %v2896_v32  ;;  %v3517_v7 = vld [vmem:[#allocation5 + $0x774] sm:$0xf0]  ;;  %v3256_v8 = vld [vmem:[#allocation5 + $0x7f0] sm:$0xf] }
  0x55   :  { %1852 = vmatpush.bf16.msra.mxu3 %v3001_v38  ;;  %v2833_v38 = vor.u32 %v3427_v31, %v2832_v29  ;;  %v2961_v46 = vor.u32 %v3459_v35, %v2960_v34  ;;  %v2216_v16 = vld [vmem:[#allocation2 + $0x28] sm:$0xf]  ;;  %v3266_v19 = vld [vmem:[#allocation2 + $0x24] sm:$0xf]  ;;  %v3267_v23 = vld [vmem:[#allocation2 + $0x2c] sm:$0xf] }
  0x56   :  { %1811 = vmatpush.bf16.msra.mxu0 %v2801_v48  ;;  %v2888_v48 = vld [vmem:[#allocation5 + $0x510] sm:$0xf]  ;;  %v2210_v22 = vld [vmem:[#allocation2 + $0x60] sm:$0xf0]  ;;  %v3056_v27 = vld [vmem:[#allocation5 + $0x660] sm:$0xf] }
  0x57   :  { %1825 = vmatpush.bf16.msra.mxu1 %v2865_v49  ;;  %v3441_v49 = vld [vmem:[#allocation5 + $0x514] sm:$0xf0]  ;;  %v3483_v28 = vld [vmem:[#allocation5 + $0x664] sm:$0xf0]  ;;  %v3120_v29 = vld [vmem:[#allocation5 + $0x6e0] sm:$0xf] }
  0x58   :  { %1839 = vmatpush.bf16.msra.mxu2 %v2929_v50  ;;  %v2952_v50 = vld [vmem:[#allocation5 + $0x590] sm:$0xf]  ;;  %v3499_v32 = vld [vmem:[#allocation5 + $0x6e4] sm:$0xf0]  ;;  %v3184_v33 = vld [vmem:[#allocation5 + $0x760] sm:$0xf] }
  0x59   :  { %1853 = vmatpush.bf16.msra.mxu3 %v2993_v54  ;;  %v2761_v54 = vor.u32 %v3409_v41, %v2760_v37  ;;  %v2953_v2 = vor.u32 %v3457_v51, %v2952_v50  ;;  %v3515_v34 = vld [vmem:[#allocation5 + $0x764] sm:$0xf0]  ;;  %v3248_v37 = vld [vmem:[#allocation5 + $0x7e0] sm:$0xf]  ;;  %v3057_v41 = vor.u32 %v3483_v28, %v3056_v27  ;;  %v3121_v42 = vor.u32 %v3499_v32, %v3120_v29  ;;  %v3497_v51 = vld [vmem:[#allocation5 + $0x6d4] sm:$0xf0] }
  0x5a   :  { %1812 = vmatpush.bf16.msra.mxu0 %v2793_v61  ;;  %v2889_v61 = vor.u32 %v3441_v49, %v2888_v48  ;;  %v3185_v45 = vor.u32 %v3515_v34, %v3184_v33  ;;  %v3481_v48 = vld [vmem:[#allocation5 + $0x654] sm:$0xf0]  ;;  %v3112_v49 = vld [vmem:[#allocation5 + $0x6d0] sm:$0xf]  ;;  %v3495_v0 = vld [vmem:[#allocation5 + $0x6c4] sm:$0xf0] }
  0x5b   :  { %1826 = vmatpush.bf16.msra.mxu1 %v2857_v62  ;;  %v2944_v62 = vld [vmem:[#allocation5 + $0x580] sm:$0xf]  ;;  %v3176_v52 = vld [vmem:[#allocation5 + $0x750] sm:$0xf]  ;;  %v3513_v53 = vld [vmem:[#allocation5 + $0x754] sm:$0xf0]  ;;  %v3113_v57 = vor.u32 %v3497_v51, %v3112_v49 }
  0x5c   :  { %1840 = vmatpush.bf16.msra.mxu2 %v2921_v63  ;;  %v3455_v63 = vld [vmem:[#allocation5 + $0x584] sm:$0xf0]  ;;  %v3529_v55 = vld [vmem:[#allocation5 + $0x7d4] sm:$0xf0]  ;;  %v3177_v59 = vor.u32 %v3513_v53, %v3176_v52  ;;  %v3152_v28 = vld [vmem:[#allocation5 + $0x720] sm:$0xf] }
  0x5d   :  { %1854 = vmatpush.bf16.msra.mxu3 %v2985_v4  ;;  %v3128_v4 = vld [vmem:[#allocation5 + $0x6f0] sm:$0xf]  ;;  %v2945_v20 = vor.u32 %v3455_v63, %v2944_v62  ;;  %v3104_v62 = vld [vmem:[#allocation5 + $0x6c0] sm:$0xf]  ;;  %v3511_v3 = vld [vmem:[#allocation5 + $0x744] sm:$0xf0] }
  0x5e   :  { %1813 = vmatpush.bf16.msra.mxu0 %v2785_v11  ;;  %v3533_v11 = vld [vmem:[#allocation5 + $0x7f4] sm:$0xf0]  ;;  %v3491_v27 = vld [vmem:[#allocation5 + $0x6a4] sm:$0xf0]  ;;  %v3016_v34 = vld [vmem:[#allocation5 + $0x610] sm:$0xf] }
  0x5f   :  { %1827 = vmatpush.bf16.msra.mxu1 %v2849_v12  ;;  %v2208_v12 = vld [vmem:[#allocation2 + $0x20] sm:$0xf]  ;;  %v3507_v29 = vld [vmem:[#allocation5 + $0x724] sm:$0xf0]  ;;  %v3505_v49 = vld [vmem:[#allocation5 + $0x714] sm:$0xf0] }
  0x60   :  { %1841 = vmatpush.bf16.msra.mxu2 %v2913_v13  ;;  %v3274_v13 = vld [vmem:[#allocation2 + $0x5c] sm:$0xf0]  ;;  %v3523_v32 = vld [vmem:[#allocation5 + $0x7a4] sm:$0xf0]  ;;  %v3521_v51 = vld [vmem:[#allocation5 + $0x794] sm:$0xf0] }
  0x61   :  { %1855 = vmatpush.bf16.msra.mxu3 %v2977_v18  ;;  %v3275_v18 = vld [vmem:[#allocation2 + $0x64] sm:$0xf0]  ;;  %v3709_v31 = vor.u32 %v3274_v13, %v2208_v12  ;;  %v3096_v12 = vld [vmem:[#allocation5 + $0x6b0] sm:$0xf]  ;;  %v3008_v52 = vld [vmem:[#allocation5 + $0x600] sm:$0xf] }
  0x62   :  { %1814 = vmatpush.bf16.msra.mxu0 %v2777_v24  ;;  %v2218_v24 = vld [vmem:[#allocation2 + $0x68] sm:$0xf0]  ;;  %v3711_v35 = vor.u32 %v3275_v18, %v2216_v16  ;;  %v3509_v16 = vld [vmem:[#allocation5 + $0x734] sm:$0xf0]  ;;  %v3224_v18 = vld [vmem:[#allocation5 + $0x7b0] sm:$0xf] }
  0x63   :  { %1828 = vmatpush.bf16.msra.mxu1 %v2841_v25  ;;  %v3129_v25 = vor.u32 %v3501_v5, %v3128_v4  ;;  %v3232_v4 = vld [vmem:[#allocation5 + $0x7c0] sm:$0xf]  ;;  %v3527_v5 = vld [vmem:[#allocation5 + $0x7c4] sm:$0xf0]  ;;  %s3653_s0 = smov [#allocation8]   ;;  %s2160_s5 = sshll.u32 %s3799_s3, 4  ;;  %s2161_s5 = int_to_ptr.hbm [resolvable:$true] %s2160_s5 }
  0x64   :  { %1842 = vmatpush.bf16.msra.mxu2 %v2905_v26  ;;  %v3193_v26 = vor.u32 %v3517_v7, %v3192_v6  ;;  %v3105_v7 = vor.u32 %v3495_v0, %v3104_v62  ;;  %v3233_v13 = vor.u32 %v3527_v5, %v3232_v4  ;;  %v3471_v53 = vld [vmem:[#allocation5 + $0x604] sm:$0xf0]  ;;  %v3200_v62 = vld [vmem:[#allocation5 + $0x780] sm:$0xf]  ;;  %v3292_v0 = vld [vmem:[#allocation5 + $0x74] sm:$0xf] }
  0x65   :  { %1856 = vmatpush.bf16.msra.mxu3 %v2969_v30  ;;  %v3257_v30 = vor.u32 %v3533_v11, %v3256_v8  ;;  %v3477_v11 = vld [vmem:[#allocation5 + $0x634] sm:$0xf0]  ;;  %v3308_v4 = vld [vmem:[#allocation5 + $0xf4] sm:$0xf]  ;;  %v2362_v5 = vld [vmem:[#allocation5 + $0xf8] sm:$0xf0] }
  0x66   :  { %1815 = vmatpush.bf16.msra.mxu0 %v2769_v36  ;;  %v3713_v36 = vor.u32 %v3266_v19, %v2210_v22  ;;  %v3525_v19 = vld [vmem:[#allocation5 + $0x7b4] sm:$0xf0]  ;;  %s2158_s2 = sshll.u32 %s3653_s0, 4  ;;  %s3654_s6 = smov 256   ;;  %s2159_s2 = int_to_ptr.vmem [resolvable:$true] %s2158_s2 }
  0x67   :  { %1829 = vmatpush.bf16.msra.mxu1 %v2833_v38  ;;  %v3531_v38 = vld [vmem:[#allocation5 + $0x7e4] sm:$0xf0]  ;;  %s3655_s7 = smov 16  }
  0x68   :  { %1843 = vmatpush.bf16.msra.mxu2 %v2897_v40  ;;  %v3715_v40 = vor.u32 %v3267_v23, %v2218_v24  ;;  %v3249_v50 = vor.u32 %v3531_v38, %v3248_v37  ;;  %v3024_v23 = vld [vmem:[#allocation5 + $0x620] sm:$0xf]  ;;  %v3475_v24 = vld [vmem:[#allocation5 + $0x624] sm:$0xf0]  ;;  %v3153_v38 = vor.u32 %v3507_v29, %v3152_v28  ;;  %v2290_v28 = vld [vmem:[#allocation5 + $0x68] sm:$0xf0] }
  0x69   :  { %1857 = vmatpush.bf16.msra.mxu3 %v2961_v46  ;;  %v3048_v46 = vld [vmem:[#allocation5 + $0x650] sm:$0xf]  ;;  %v3025_v33 = vor.u32 %v3475_v24, %v3024_v23  ;;  %v3269_v23 = vld [vmem:[#allocation2 + $0x3c] sm:$0xf]  ;;  %v3306_v29 = vld [vmem:[#allocation5 + $0xe4] sm:$0xf] }
  0x6a   :  { %1816 = vmatpush.bf16.msra.mxu0 %v2761_v54  ;;  %v3240_v54 = vld [vmem:[#allocation5 + $0x7d0] sm:$0xf]  ;;  %v3049_v56 = vor.u32 %v3481_v48, %v3048_v46  ;;  %v2234_v24 = vld [vmem:[#allocation2 + $0x78] sm:$0xf0] }
  0x6b   :  { %1830 = vmatpush.bf16.msra.mxu1 %v2825_v60  ;;  %v3040_v60 = vld [vmem:[#allocation5 + $0x640] sm:$0xf]  ;;  %v3241_v63 = vor.u32 %v3529_v55, %v3240_v54  ;;  %v3144_v48 = vld [vmem:[#allocation5 + $0x710] sm:$0xf] }
  0x6c   :  { %1844 = vmatpush.bf16.msra.mxu2 %v2889_v61  ;;  %v3479_v61 = vld [vmem:[#allocation5 + $0x644] sm:$0xf0]  ;;  %v3072_v55 = vld [vmem:[#allocation5 + $0x680] sm:$0xf] }
  0x6d   :  { %1858 = vmatpush.bf16.msra.mxu3 %v2953_v2  ;;  %v3168_v2 = vld [vmem:[#allocation5 + $0x740] sm:$0xf]  ;;  %v3041_v6 = vor.u32 %v3479_v61, %v3040_v60  ;;  %v3145_v61 = vor.u32 %v3505_v49, %v3144_v48 }
  0x6e   :  { %1817 = vmatpush.bf16.msra.mxu0 %v2753_v9  ;;  %v3169_v8 = vor.u32 %v3511_v3, %v3168_v2  ;;  %v3032_v9 = vld [vmem:[#allocation5 + $0x630] sm:$0xf]  ;;  %v2298_v3 = vld [vmem:[#allocation5 + $0x78] sm:$0xf0] }
  0x6f   :  { %1831 = vmatpush.bf16.msra.mxu1 %v2817_v14  ;;  %v3493_v14 = vld [vmem:[#allocation5 + $0x6b4] sm:$0xf0] }
  0x70   :  { %1845 = vmatpush.bf16.msra.mxu2 %v2881_v15  ;;  %v3160_v15 = vld [vmem:[#allocation5 + $0x730] sm:$0xf] }
  0x71   :  { %1859 = vmatpush.bf16.msra.mxu3 %v2945_v20  ;;  %1818 = vmatmul.bf16.vlgmr.msra.gmra.mxu0 %v3709_v31  ;;  %v3033_v20 = vor.u32 %v3477_v11, %v3032_v9  ;;  %v3161_v22 = vor.u32 %v3509_v16, %v3160_v15  ;;  %v3009_v9 = vor.u32 %v3471_v53, %v3008_v52  ;;  %v2490_v11 = vld [vmem:[#allocation5 + $0x1f8] sm:$0xf0]  ;;  %v2232_v16 = vld [vmem:[#allocation2 + $0x38] sm:$0xf]  ;;  %v3304_v53 = vld [vmem:[#allocation5 + $0xd4] sm:$0xf] }
  0x72   :  { %1866 = vmatpush.bf16.msrb.mxu0 %v3065_v21  ;;  %1832 = vmatmul.bf16.vlgmr.msra.gmra.mxu1 %v3713_v36  ;;  %v3097_v21 = vor.u32 %v3493_v14, %v3096_v12  ;;  %v2224_v12 = vld [vmem:[#allocation2 + $0x30] sm:$0xf]  ;;  %v2282_v52 = vld [vmem:[#allocation5 + $0x58] sm:$0xf0] }
  0x73   :  { %1880 = vmatpush.bf16.msrb.mxu1 %v3129_v25  ;;  %1846 = vmatmul.bf16.vlgmr.msra.gmra.mxu2 %v3711_v35  ;;  %v3088_v25 = vld [vmem:[#allocation5 + $0x6a0] sm:$0xf] }
  0x74   :  { %1894 = vmatpush.bf16.msrb.mxu2 %v3193_v26  ;;  %1860 = vmatmul.bf16.vlgmr.msra.gmra.mxu3 %v3715_v40  ;;  %v3225_v26 = vor.u32 %v3525_v19, %v3224_v18  ;;  %v3089_v37 = vor.u32 %v3491_v27, %v3088_v25  ;;  %v3277_v18 = vld [vmem:[#allocation2 + $0x74] sm:$0xf0]  ;;  %v3268_v19 = vld [vmem:[#allocation2 + $0x34] sm:$0xf]  ;;  %v2365_v25 = vor.u32 %v3308_v4, %v2362_v5  ;;  %v3290_v27 = vld [vmem:[#allocation5 + $0x64] sm:$0xf] }
  0x75   :  { %1908 = vmatpush.bf16.msrb.mxu3 %v3257_v30  ;;  %v3216_v30 = vld [vmem:[#allocation5 + $0x7a0] sm:$0xf]  ;;  %v2293_v48 = vor.u32 %v3290_v27, %v2290_v28  ;;  %v2338_v5 = vld [vmem:[#allocation5 + $0xc8] sm:$0xf0]  ;;  %v3282_v27 = vld [vmem:[#allocation5 + $0x24] sm:$0xf] }
  0x76   :  { %1867 = vmatpush.bf16.msrb.mxu0 %v3057_v41  ;;  %v3473_v41 = vld [vmem:[#allocation5 + $0x614] sm:$0xf0]  ;;  %v3217_v46 = vor.u32 %v3523_v32, %v3216_v30  ;;  %v2258_v28 = vld [vmem:[#allocation5 + $0x28] sm:$0xf0] }
  0x77   :  { %1881 = vmatpush.bf16.msrb.mxu1 %v3121_v42  ;;  %v3080_v42 = vld [vmem:[#allocation5 + $0x690] sm:$0xf]  ;;  %v3017_v54 = vor.u32 %v3473_v41, %v3016_v34  ;;  %v3322_v34 = vld [vmem:[#allocation5 + $0x164] sm:$0xf] }
  0x78   :  { %1895 = vmatpush.bf16.msrb.mxu2 %v3185_v45  ;;  %v3489_v45 = vld [vmem:[#allocation5 + $0x694] sm:$0xf0] }
  0x79   :  { %1909 = vmatpush.bf16.msrb.mxu3 %v3249_v50  ;;  %v3208_v50 = vld [vmem:[#allocation5 + $0x790] sm:$0xf]  ;;  %v3081_v60 = vor.u32 %v3489_v45, %v3080_v42  ;;  %v3338_v42 = vld [vmem:[#allocation5 + $0x1e4] sm:$0xf]  ;;  %v2482_v45 = vld [vmem:[#allocation5 + $0x1e8] sm:$0xf0] }
  0x7a   :  { %1868 = vmatpush.bf16.msrb.mxu0 %v3049_v56  ;;  %v3487_v56 = vld [vmem:[#allocation5 + $0x684] sm:$0xf0]  ;;  %v3209_v2 = vor.u32 %v3521_v51, %v3208_v50  ;;  %v3288_v51 = vld [vmem:[#allocation5 + $0x54] sm:$0xf] }
  0x7b   :  { %1882 = vmatpush.bf16.msrb.mxu1 %v3113_v57  ;;  %v3136_v57 = vld [vmem:[#allocation5 + $0x700] sm:$0xf]  ;;  %v3073_v14 = vor.u32 %v3487_v56, %v3072_v55  ;;  %v2346_v55 = vld [vmem:[#allocation5 + $0xd8] sm:$0xf0]  ;;  %v3320_v56 = vld [vmem:[#allocation5 + $0x154] sm:$0xf] }
  0x7c   :  { %1896 = vmatpush.bf16.msrb.mxu2 %v3177_v59  ;;  %v3503_v59 = vld [vmem:[#allocation5 + $0x704] sm:$0xf0] }
  0x7d   :  { %1910 = vmatpush.bf16.msrb.mxu3 %v3241_v63  ;;  %v3519_v63 = vld [vmem:[#allocation5 + $0x784] sm:$0xf0]  ;;  %v3137_v15 = vor.u32 %v3503_v59, %v3136_v57  ;;  %v2410_v57 = vld [vmem:[#allocation5 + $0x158] sm:$0xf0]  ;;  %v3336_v59 = vld [vmem:[#allocation5 + $0x1d4] sm:$0xf] }
  0x7e   :  { %1869 = vmatpush.bf16.msrb.mxu0 %v3041_v6  ;;  %v3324_v6 = vld [vmem:[#allocation5 + $0x174] sm:$0xf] }
  0x7f   :  { %1883 = vmatpush.bf16.msrb.mxu1 %v3105_v7  ;;  %v2426_v7 = vld [vmem:[#allocation5 + $0x178] sm:$0xf0] }
  0x80   :  { %1897 = vmatpush.bf16.msrb.mxu2 %v3169_v8  ;;  %v3340_v8 = vld [vmem:[#allocation5 + $0x1f4] sm:$0xf] }
  0x81   :  { %1911 = vmatpush.bf16.msrb.mxu3 %v3233_v13  ;;  %v3276_v13 = vld [vmem:[#allocation2 + $0x6c] sm:$0xf0]  ;;  %v2493_v30 = vor.u32 %v3340_v8, %v2490_v11  ;;  %v3334_v8 = vld [vmem:[#allocation5 + $0x1c4] sm:$0xf] }
  0x82   :  { %1870 = vmatpush.bf16.msrb.mxu0 %v3033_v20  ;;  %v3201_v20 = vor.u32 %v3519_v63, %v3200_v62  ;;  %v3721_v32 = vor.u32 %v3276_v13, %v2224_v12  ;;  %v2349_v62 = vor.u32 %v3304_v53, %v2346_v55  ;;  %v2413_v63 = vor.u32 %v3320_v56, %v2410_v57  ;;  %v3296_v53 = vld [vmem:[#allocation5 + $0x94] sm:$0xf]  ;;  %v2314_v55 = vld [vmem:[#allocation5 + $0x98] sm:$0xf0] }
  0x83   :  { %1884 = vmatpush.bf16.msrb.mxu1 %v3097_v21  ;;  %v2301_v21 = vor.u32 %v3292_v0, %v2298_v3  ;;  %v3286_v0 = vld [vmem:[#allocation5 + $0x44] sm:$0xf]  ;;  %v3312_v56 = vld [vmem:[#allocation5 + $0x114] sm:$0xf]  ;;  %v2378_v57 = vld [vmem:[#allocation5 + $0x118] sm:$0xf0] }
  0x84   :  { %1898 = vmatpush.bf16.msrb.mxu2 %v3161_v22  ;;  %v2226_v22 = vld [vmem:[#allocation2 + $0x70] sm:$0xf0]  ;;  %v3302_v3 = vld [vmem:[#allocation5 + $0xc4] sm:$0xf] }
  0x85   :  { %1912 = vmatpush.bf16.msrb.mxu3 %v3225_v26  ;;  %v2429_v26 = vor.u32 %v3324_v6, %v2426_v7  ;;  %v3725_v41 = vor.u32 %v3268_v19, %v2226_v22  ;;  %v3318_v6 = vld [vmem:[#allocation5 + $0x144] sm:$0xf]  ;;  %v2402_v7 = vld [vmem:[#allocation5 + $0x148] sm:$0xf0]  ;;  %v2341_v12 = vor.u32 %v3302_v3, %v2338_v5  ;;  %v2330_v19 = vld [vmem:[#allocation5 + $0xb8] sm:$0xf0] }
  0x86   :  { %1871 = vmatpush.bf16.msrb.mxu0 %v3025_v33  ;;  %v2354_v33 = vld [vmem:[#allocation5 + $0xe8] sm:$0xf0]  ;;  %v2405_v13 = vor.u32 %v3318_v6, %v2402_v7  ;;  %v3332_v22 = vld [vmem:[#allocation5 + $0x1b4] sm:$0xf]  ;;  %v3294_v3 = vld [vmem:[#allocation5 + $0x84] sm:$0xf] }
  0x87   :  { %1885 = vmatpush.bf16.msrb.mxu1 %v3089_v37  ;;  %v2418_v37 = vld [vmem:[#allocation5 + $0x168] sm:$0xf0]  ;;  %v2357_v49 = vor.u32 %v3306_v29, %v2354_v33  ;;  %v3298_v29 = vld [vmem:[#allocation5 + $0xa4] sm:$0xf] }
  0x88   :  { %1899 = vmatpush.bf16.msrb.mxu2 %v3153_v38  ;;  %v3723_v38 = vor.u32 %v3277_v18, %v2232_v16  ;;  %v2421_v50 = vor.u32 %v3322_v34, %v2418_v37  ;;  %v3300_v16 = vld [vmem:[#allocation5 + $0xb4] sm:$0xf]  ;;  %v2322_v33 = vld [vmem:[#allocation5 + $0xa8] sm:$0xf0]  ;;  %v3314_v34 = vld [vmem:[#allocation5 + $0x124] sm:$0xf] }
  0x89   :  { %1913 = vmatpush.bf16.msrb.mxu3 %v3217_v46  ;;  %v3727_v46 = vor.u32 %v3269_v23, %v2234_v24  ;;  %v2458_v23 = vld [vmem:[#allocation5 + $0x1b8] sm:$0xf0]  ;;  %v2386_v37 = vld [vmem:[#allocation5 + $0x128] sm:$0xf0]  ;;  %v3310_v5 = vld [vmem:[#allocation5 + $0x104] sm:$0xf] }
  0x8a   :  { %1872 = vmatpush.bf16.msrb.mxu0 %v3017_v54  ;;  %v2485_v54 = vor.u32 %v3338_v42, %v2482_v45  ;;  %v3330_v42 = vld [vmem:[#allocation5 + $0x1a4] sm:$0xf]  ;;  %v2450_v45 = vld [vmem:[#allocation5 + $0x1a8] sm:$0xf0] }
  0x8b   :  { %1886 = vmatpush.bf16.msrb.mxu1 %v3081_v60  ;;  %v2474_v60 = vld [vmem:[#allocation5 + $0x1d8] sm:$0xf0]  ;;  %v2370_v7 = vld [vmem:[#allocation5 + $0x108] sm:$0xf0] }
  0x8c   :  { %1900 = vmatpush.bf16.msrb.mxu2 %v3145_v61  ;;  %v2285_v61 = vor.u32 %v3288_v51, %v2282_v52  ;;  %v2477_v4 = vor.u32 %v3336_v59, %v2474_v60  ;;  %v3280_v51 = vld [vmem:[#allocation5 + $0x14] sm:$0xf]  ;;  %v2250_v52 = vld [vmem:[#allocation5 + $0x18] sm:$0xf0] }
  0x8d   :  { %1914 = vmatpush.bf16.msrb.mxu3 %v3209_v2  ;;  %v2274_v2 = vld [vmem:[#allocation5 + $0x48] sm:$0xf0]  ;;  %v3328_v59 = vld [vmem:[#allocation5 + $0x194] sm:$0xf]  ;;  %v2442_v60 = vld [vmem:[#allocation5 + $0x198] sm:$0xf0] }
  0x8e   :  { %1873 = vmatpush.bf16.msrb.mxu0 %v3009_v9  ;;  %v2466_v9 = vld [vmem:[#allocation5 + $0x1c8] sm:$0xf0]  ;;  %v2277_v11 = vor.u32 %v3286_v0, %v2274_v2  ;;  %v2317_v0 = vor.u32 %v3296_v53, %v2314_v55  ;;  %v2381_v2 = vor.u32 %v3312_v56, %v2378_v57  ;;  %v2445_v6 = vor.u32 %v3328_v59, %v2442_v60  ;;  %v3368_v53 = vld [vmem:[#allocation5 + $0x2d4] sm:$0xf]  ;;  %v2602_v55 = vld [vmem:[#allocation5 + $0x2d8] sm:$0xf0] }
  0x8f   :  { %1887 = vmatpush.bf16.msrb.mxu1 %v3073_v14  ;;  %v3284_v14 = vld [vmem:[#allocation5 + $0x34] sm:$0xf]  ;;  %v2469_v18 = vor.u32 %v3334_v8, %v2466_v9  ;;  %v3326_v8 = vld [vmem:[#allocation5 + $0x184] sm:$0xf]  ;;  %v2434_v9 = vld [vmem:[#allocation5 + $0x188] sm:$0xf0] }
  0x90   :  { %1901 = vmatpush.bf16.msrb.mxu2 %v3137_v15  ;;  %v2266_v15 = vld [vmem:[#allocation5 + $0x38] sm:$0xf0]  ;;  %v3384_v56 = vld [vmem:[#allocation5 + $0x354] sm:$0xf] }
  0x91   :  { %1915 = vmatpush.bf16.msrb.mxu3 %v3201_v20  ;;  %1874 = vmatmul.bf16.vlgmr.msrb.gmra.mxu0 %v3721_v32  ;;  %v3316_v20 = vld [vmem:[#allocation5 + $0x134] sm:$0xf]  ;;  %v2269_v24 = vor.u32 %v3284_v14, %v2266_v15  ;;  %v2618_v15 = vld [vmem:[#allocation5 + $0x2f8] sm:$0xf0] }
  0x92   :  { %1922 = vmatpush.bf16.msra.mxu0 %v2301_v21  ;;  %1888 = vmatmul.bf16.vlgmr.msrb.gmra.mxu1 %v3725_v41  ;;  %v2394_v21 = vld [vmem:[#allocation5 + $0x138] sm:$0xf0]  ;;  %v3400_v59 = vld [vmem:[#allocation5 + $0x3d4] sm:$0xf] }
  0x93   :  { %1936 = vmatpush.bf16.msra.mxu1 %v2365_v25  ;;  %1902 = vmatmul.bf16.vlgmr.msrb.gmra.mxu2 %v3723_v38  ;;  %v2333_v25 = vor.u32 %v3300_v16, %v2330_v19  ;;  %v3388_v16 = vld [vmem:[#allocation5 + $0x374] sm:$0xf]  ;;  %v2666_v57 = vld [vmem:[#allocation5 + $0x358] sm:$0xf0] }
  0x94   :  { %1950 = vmatpush.bf16.msra.mxu2 %v2429_v26  ;;  %1916 = vmatmul.bf16.vlgmr.msrb.gmra.mxu3 %v3727_v46  ;;  %v2397_v26 = vor.u32 %v3316_v20, %v2394_v21  ;;  %v2373_v20 = vor.u32 %v3310_v5, %v2370_v7  ;;  %v3404_v21 = vld [vmem:[#allocation5 + $0x3f4] sm:$0xf]  ;;  %v2730_v60 = vld [vmem:[#allocation5 + $0x3d8] sm:$0xf0]  ;;  %v3382_v5 = vld [vmem:[#allocation5 + $0x344] sm:$0xf] }
  0x95   :  { %1964 = vmatpush.bf16.msra.mxu3 %v2493_v30  ;;  %v2461_v30 = vor.u32 %v3332_v22, %v2458_v23  ;;  %v2746_v22 = vld [vmem:[#allocation5 + $0x3f8] sm:$0xf0]  ;;  %v2437_v23 = vor.u32 %v3326_v8, %v2434_v9  ;;  %v3398_v7 = vld [vmem:[#allocation5 + $0x3c4] sm:$0xf]  ;;  %v3348_v9 = vld [vmem:[#allocation5 + $0x234] sm:$0xf] }
  0x96   :  { %1923 = vmatpush.bf16.msra.mxu0 %v2293_v48  ;;  %v2261_v48 = vor.u32 %v3282_v27, %v2258_v28  ;;  %v3354_v27 = vld [vmem:[#allocation5 + $0x264] sm:$0xf]  ;;  %v2546_v28 = vld [vmem:[#allocation5 + $0x268] sm:$0xf0] }
  0x97   :  { %1937 = vmatpush.bf16.msra.mxu1 %v2357_v49  ;;  %v2325_v49 = vor.u32 %v3298_v29, %v2322_v33  ;;  %v3370_v29 = vld [vmem:[#allocation5 + $0x2e4] sm:$0xf]  ;;  %v2610_v33 = vld [vmem:[#allocation5 + $0x2e8] sm:$0xf0] }
  0x98   :  { %1951 = vmatpush.bf16.msra.mxu2 %v2421_v50  ;;  %v2389_v50 = vor.u32 %v3314_v34, %v2386_v37  ;;  %v3386_v34 = vld [vmem:[#allocation5 + $0x364] sm:$0xf]  ;;  %v2674_v37 = vld [vmem:[#allocation5 + $0x368] sm:$0xf0] }
  0x99   :  { %1965 = vmatpush.bf16.msra.mxu3 %v2485_v54  ;;  %v2453_v54 = vor.u32 %v3330_v42, %v2450_v45  ;;  %v3402_v42 = vld [vmem:[#allocation5 + $0x3e4] sm:$0xf]  ;;  %v2738_v45 = vld [vmem:[#allocation5 + $0x3e8] sm:$0xf0] }
  0x9a   :  { %1924 = vmatpush.bf16.msra.mxu0 %v2285_v61  ;;  %v2253_v61 = vor.u32 %v3280_v51, %v2250_v52  ;;  %v3352_v51 = vld [vmem:[#allocation5 + $0x254] sm:$0xf]  ;;  %v2538_v52 = vld [vmem:[#allocation5 + $0x258] sm:$0xf0] }
  0x9b   :  { %1938 = vmatpush.bf16.msra.mxu1 %v2349_v62  ;;  %v3278_v62 = vld [vmem:[#allocation5 + $0x4] sm:$0xf] }
  0x9c   :  { %1952 = vmatpush.bf16.msra.mxu2 %v2413_v63  ;;  %v2242_v63 = vld [vmem:[#allocation5 + $0x8] sm:$0xf0] }
  0x9d   :  { %1966 = vmatpush.bf16.msra.mxu3 %v2477_v4  ;;  %v2306_v4 = vld [vmem:[#allocation5 + $0x88] sm:$0xf0]  ;;  %v2245_v14 = vor.u32 %v3278_v62, %v2242_v63  ;;  %v2605_v62 = vor.u32 %v3368_v53, %v2602_v55  ;;  %v2669_v63 = vor.u32 %v3384_v56, %v2666_v57  ;;  %v2634_v53 = vld [vmem:[#allocation5 + $0x318] sm:$0xf0]  ;;  %v3342_v57 = vld [vmem:[#allocation5 + $0x204] sm:$0xf] }
  0x9e   :  { %1925 = vmatpush.bf16.msra.mxu0 %v2277_v11  ;;  %v3356_v11 = vld [vmem:[#allocation5 + $0x274] sm:$0xf]  ;;  %v2309_v19 = vor.u32 %v3294_v3, %v2306_v4  ;;  %v3366_v3 = vld [vmem:[#allocation5 + $0x2c4] sm:$0xf]  ;;  %v2733_v4 = vor.u32 %v3400_v59, %v2730_v60  ;;  %v2698_v55 = vld [vmem:[#allocation5 + $0x398] sm:$0xf0] }
  0x9f   :  { %1939 = vmatpush.bf16.msra.mxu1 %v2341_v12  ;;  %v2554_v12 = vld [vmem:[#allocation5 + $0x278] sm:$0xf0]  ;;  %v2498_v59 = vld [vmem:[#allocation5 + $0x208] sm:$0xf0] }
  0xa0   :  { %1953 = vmatpush.bf16.msra.mxu2 %v2405_v13  ;;  %v3372_v13 = vld [vmem:[#allocation5 + $0x2f4] sm:$0xf] }
  0xa1   :  { %1967 = vmatpush.bf16.msra.mxu3 %v2469_v18  ;;  %v2682_v18 = vld [vmem:[#allocation5 + $0x378] sm:$0xf0] }
  0xa2   :  { %1926 = vmatpush.bf16.msra.mxu0 %v2269_v24  ;;  %v2557_v24 = vor.u32 %v3356_v11, %v2554_v12  ;;  %v2522_v11 = vld [vmem:[#allocation5 + $0x238] sm:$0xf0]  ;;  %v3364_v12 = vld [vmem:[#allocation5 + $0x2b4] sm:$0xf] }
  0xa3   :  { %1940 = vmatpush.bf16.msra.mxu1 %v2333_v25  ;;  %v2621_v25 = vor.u32 %v3372_v13, %v2618_v15  ;;  %v3380_v15 = vld [vmem:[#allocation5 + $0x334] sm:$0xf] }
  0xa4   :  { %1954 = vmatpush.bf16.msra.mxu2 %v2397_v26  ;;  %v2685_v26 = vor.u32 %v3388_v16, %v2682_v18  ;;  %v2650_v16 = vld [vmem:[#allocation5 + $0x338] sm:$0xf0]  ;;  %v3396_v18 = vld [vmem:[#allocation5 + $0x3b4] sm:$0xf] }
  0xa5   :  { %1968 = vmatpush.bf16.msra.mxu3 %v2461_v30  ;;  %v2749_v30 = vor.u32 %v3404_v21, %v2746_v22  ;;  %v2653_v22 = vor.u32 %v3380_v15, %v2650_v16 }
  0xa6   :  { %1927 = vmatpush.bf16.msra.mxu0 %v2261_v48  ;;  %v2549_v48 = vor.u32 %v3354_v27, %v2546_v28  ;;  %v2578_v27 = vld [vmem:[#allocation5 + $0x2a8] sm:$0xf0]  ;;  %v3378_v28 = vld [vmem:[#allocation5 + $0x324] sm:$0xf] }
  0xa7   :  { %1941 = vmatpush.bf16.msra.mxu1 %v2325_v49  ;;  %v2613_v49 = vor.u32 %v3370_v29, %v2610_v33  ;;  %v2642_v29 = vld [vmem:[#allocation5 + $0x328] sm:$0xf0] }
  0xa8   :  { %1955 = vmatpush.bf16.msra.mxu2 %v2389_v50  ;;  %v2677_v50 = vor.u32 %v3386_v34, %v2674_v37  ;;  %v2706_v33 = vld [vmem:[#allocation5 + $0x3a8] sm:$0xf0] }
  0xa9   :  { %1969 = vmatpush.bf16.msra.mxu3 %v2453_v54  ;;  %v2741_v54 = vor.u32 %v3402_v42, %v2738_v45  ;;  %v2645_v42 = vor.u32 %v3378_v28, %v2642_v29  ;;  %v3344_v45 = vld [vmem:[#allocation5 + $0x214] sm:$0xf] }
  0xaa   :  { %1928 = vmatpush.bf16.msra.mxu0 %v2253_v61  ;;  %v2541_v61 = vor.u32 %v3352_v51, %v2538_v52  ;;  %v2570_v51 = vld [vmem:[#allocation5 + $0x298] sm:$0xf0]  ;;  %v3376_v52 = vld [vmem:[#allocation5 + $0x314] sm:$0xf] }
  0xab   :  { %1942 = vmatpush.bf16.msra.mxu1 %v2317_v0  ;;  %v3350_v0 = vld [vmem:[#allocation5 + $0x244] sm:$0xf] }
  0xac   :  { %1956 = vmatpush.bf16.msra.mxu2 %v2381_v2  ;;  %v2530_v2 = vld [vmem:[#allocation5 + $0x248] sm:$0xf0] }
  0xad   :  { %1970 = vmatpush.bf16.msra.mxu3 %v2445_v6  ;;  %v2658_v6 = vld [vmem:[#allocation5 + $0x348] sm:$0xf0] }
  0xae   :  { %1929 = vmatpush.bf16.msra.mxu0 %v2245_v14  ;;  %v2586_v14 = vld [vmem:[#allocation5 + $0x2b8] sm:$0xf0] }
  0xaf   :  { %1943 = vmatpush.bf16.msra.mxu1 %v2309_v19  ;;  %v2714_v19 = vld [vmem:[#allocation5 + $0x3b8] sm:$0xf0]  ;;  %v2589_v21 = vor.u32 %v3364_v12, %v2586_v14  ;;  %v3468_v12 = vld [vmem:[#allocation5 + $0x5f4] sm:$0xf] }
  0xb0   :  { %1957 = vmatpush.bf16.msra.mxu2 %v2373_v20  ;;  %v2525_v20 = vor.u32 %v3348_v9, %v2522_v11 }
  0xb1   :  { %1971 = vmatpush.bf16.msra.mxu3 %v2437_v23  ;;  %1930 = vmatmul.bf16.vlgmr.msra.gmra.mxu0 %v3685_v58  ;;  %v2594_v58 = vld [vmem:[#allocation5 + $0x2c8] sm:$0xf0]  ;;  %v3346_v23 = vld [vmem:[#allocation5 + $0x224] sm:$0xf] }
  0xb2   :  { %1978 = vmatpush.bf16.msrb.mxu0 %v2557_v24  ;;  %1944 = vmatmul.bf16.vlgmr.msra.gmra.mxu1 %v3691_v10  ;;  %v2533_v10 = vor.u32 %v3350_v0, %v2530_v2  ;;  %v2597_v8 = vor.u32 %v3366_v3, %v2594_v58  ;;  %v2514_v24 = vld [vmem:[#allocation5 + $0x228] sm:$0xf0]  ;;  %v3374_v0 = vld [vmem:[#allocation5 + $0x304] sm:$0xf] }
  0xb3   :  { %1992 = vmatpush.bf16.msrb.mxu1 %v2621_v25  ;;  %1958 = vmatmul.bf16.vlgmr.msra.gmra.mxu2 %v3687_v1  ;;  %v2722_v1 = vld [vmem:[#allocation5 + $0x3c8] sm:$0xf0]  ;;  %v3362_v25 = vld [vmem:[#allocation5 + $0x2a4] sm:$0xf]  ;;  %v2517_v34 = vor.u32 %v3346_v23, %v2514_v24 }
  0xb4   :  { %2006 = vmatpush.bf16.msrb.mxu2 %v2685_v26  ;;  %1972 = vmatmul.bf16.vlgmr.msra.gmra.mxu3 %v3693_v17  ;;  %v2661_v17 = vor.u32 %v3382_v5, %v2658_v6  ;;  %v2725_v13 = vor.u32 %v3398_v7, %v2722_v1  ;;  %v2717_v26 = vor.u32 %v3396_v18, %v2714_v19  ;;  %v2626_v3 = vld [vmem:[#allocation5 + $0x308] sm:$0xf0]  ;;  %v3420_v5 = vld [vmem:[#allocation5 + $0x474] sm:$0xf]  ;;  %v2810_v6 = vld [vmem:[#allocation5 + $0x478] sm:$0xf0] }
  0xb5   :  { %2020 = vmatpush.bf16.msrb.mxu3 %v2749_v30  ;;  %v3394_v30 = vld [vmem:[#allocation5 + $0x3a4] sm:$0xf]  ;;  %v2581_v37 = vor.u32 %v3362_v25, %v2578_v27  ;;  %v2690_v58 = vld [vmem:[#allocation5 + $0x388] sm:$0xf0]  ;;  %v3436_v7 = vld [vmem:[#allocation5 + $0x4f4] sm:$0xf]  ;;  %v2501_v1 = vor.u32 %v3342_v57, %v2498_v59  ;;  %v2629_v11 = vor.u32 %v3374_v0, %v2626_v3  ;;  %v2813_v15 = vor.u32 %v3420_v5, %v2810_v6 }
  0xb6   :  { %1979 = vmatpush.bf16.msrb.mxu0 %v2549_v48  ;;  %v2506_v48 = vld [vmem:[#allocation5 + $0x218] sm:$0xf0]  ;;  %v3418_v19 = vld [vmem:[#allocation5 + $0x464] sm:$0xf]  ;;  %v2866_v23 = vld [vmem:[#allocation5 + $0x4e8] sm:$0xf0] }
  0xb7   :  { %1993 = vmatpush.bf16.msrb.mxu1 %v2613_v49  ;;  %v3360_v49 = vld [vmem:[#allocation5 + $0x294] sm:$0xf]  ;;  %v2509_v56 = vor.u32 %v3344_v45, %v2506_v48  ;;  %v3450_v24 = vld [vmem:[#allocation5 + $0x564] sm:$0xf]  ;;  %v2930_v25 = vld [vmem:[#allocation5 + $0x568] sm:$0xf0] }
  0xb8   :  { %2007 = vmatpush.bf16.msrb.mxu2 %v2677_v50  ;;  %v2709_v50 = vor.u32 %v3394_v30, %v2706_v33  ;;  %v2573_v60 = vor.u32 %v3360_v49, %v2570_v51  ;;  %v2994_v27 = vld [vmem:[#allocation5 + $0x5e8] sm:$0xf0]  ;;  %v2933_v30 = vor.u32 %v3450_v24, %v2930_v25  ;;  %v3416_v33 = vld [vmem:[#allocation5 + $0x454] sm:$0xf]  ;;  %v2858_v45 = vld [vmem:[#allocation5 + $0x4d8] sm:$0xf0] }
  0xb9   :  { %2021 = vmatpush.bf16.msrb.mxu3 %v2741_v54  ;;  %v3392_v54 = vld [vmem:[#allocation5 + $0x394] sm:$0xf]  ;;  %v2922_v49 = vld [vmem:[#allocation5 + $0x558] sm:$0xf0]  ;;  %v2850_v59 = vld [vmem:[#allocation5 + $0x4c8] sm:$0xf0] }
  0xba   :  { %1980 = vmatpush.bf16.msrb.mxu0 %v2541_v61  ;;  %v2637_v61 = vor.u32 %v3376_v52, %v2634_v53  ;;  %v2701_v2 = vor.u32 %v3392_v54, %v2698_v55  ;;  %v3448_v48 = vld [vmem:[#allocation5 + $0x554] sm:$0xf]  ;;  %v2986_v51 = vld [vmem:[#allocation5 + $0x5d8] sm:$0xf0]  ;;  %v3414_v55 = vld [vmem:[#allocation5 + $0x444] sm:$0xf] }
  0xbb   :  { %1994 = vmatpush.bf16.msrb.mxu1 %v2605_v62  ;;  %v3358_v62 = vld [vmem:[#allocation5 + $0x284] sm:$0xf]  ;;  %v2925_v54 = vor.u32 %v3448_v48, %v2922_v49  ;;  %v3412_v0 = vld [vmem:[#allocation5 + $0x434] sm:$0xf]  ;;  %v2906_v6 = vld [vmem:[#allocation5 + $0x538] sm:$0xf0] }
  0xbc   :  { %2008 = vmatpush.bf16.msrb.mxu2 %v2669_v63  ;;  %v2562_v63 = vld [vmem:[#allocation5 + $0x288] sm:$0xf0]  ;;  %v3428_v3 = vld [vmem:[#allocation5 + $0x4b4] sm:$0xf]  ;;  %v2954_v48 = vld [vmem:[#allocation5 + $0x598] sm:$0xf0] }
  0xbd   :  { %2022 = vmatpush.bf16.msrb.mxu3 %v2733_v4  ;;  %v3390_v4 = vld [vmem:[#allocation5 + $0x384] sm:$0xf]  ;;  %v2565_v9 = vor.u32 %v3358_v62, %v2562_v63  ;;  %v3444_v5 = vld [vmem:[#allocation5 + $0x534] sm:$0xf] }
  0xbe   :  { %1981 = vmatpush.bf16.msrb.mxu0 %v2533_v10  ;;  %v2874_v10 = vld [vmem:[#allocation5 + $0x4f8] sm:$0xf0]  ;;  %v2693_v14 = vor.u32 %v3390_v4, %v2690_v58 }
  0xbf   :  { %1995 = vmatpush.bf16.msrb.mxu1 %v2597_v8  ;;  %v3452_v8 = vld [vmem:[#allocation5 + $0x574] sm:$0xf]  ;;  %v2877_v16 = vor.u32 %v3436_v7, %v2874_v10  ;;  %v2842_v58 = vld [vmem:[#allocation5 + $0x4b8] sm:$0xf0]  ;;  %v3741_v7 = vpop.f32.mrf.mxu0 }
  0xc0   :  { %2009 = vmatpush.bf16.msrb.mxu2 %v2661_v17  ;;  %v2938_v17 = vld [vmem:[#allocation5 + $0x578] sm:$0xf0] }
  0xc1   :  { %2023 = vmatpush.bf16.msrb.mxu3 %v2725_v13  ;;  %v3002_v13 = vld [vmem:[#allocation5 + $0x5f8] sm:$0xf0]  ;;  %v2941_v18 = vor.u32 %v3452_v8, %v2938_v17  ;;  %v3743_v8 = vpop.f32.mrf.mxu1 }
  0xc2   :  { %1982 = vmatpush.bf16.msrb.mxu0 %v2525_v20  ;;  %v2802_v20 = vld [vmem:[#allocation5 + $0x468] sm:$0xf0]  ;;  %v2970_v10 = vld [vmem:[#allocation5 + $0x5b8] sm:$0xf0] }
  0xc3   :  { %1996 = vmatpush.bf16.msrb.mxu1 %v2589_v21  ;;  %v3434_v21 = vld [vmem:[#allocation5 + $0x4e4] sm:$0xf]  ;;  %v2805_v28 = vor.u32 %v3418_v19, %v2802_v20  ;;  %v2898_v19 = vld [vmem:[#allocation5 + $0x528] sm:$0xf0] }
  0xc4   :  { %2010 = vmatpush.bf16.msrb.mxu2 %v2653_v22  ;;  %v3005_v22 = vor.u32 %v3468_v12, %v3002_v13  ;;  %v2869_v29 = vor.u32 %v3434_v21, %v2866_v23  ;;  %v3410_v12 = vld [vmem:[#allocation5 + $0x424] sm:$0xf]  ;;  %v2770_v13 = vld [vmem:[#allocation5 + $0x428] sm:$0xf0] }
  0xc5   :  { %2024 = vmatpush.bf16.msrb.mxu3 %v2717_v26  ;;  %v3466_v26 = vld [vmem:[#allocation5 + $0x5e4] sm:$0xf]  ;;  %v2962_v21 = vld [vmem:[#allocation5 + $0x5a8] sm:$0xf0]  ;;  %v2773_v23 = vor.u32 %v3410_v12, %v2770_v13 }
  0xc6   :  { %1983 = vmatpush.bf16.msrb.mxu0 %v2517_v34  ;;  %v2794_v34 = vld [vmem:[#allocation5 + $0x458] sm:$0xf0]  ;;  %v3458_v20 = vld [vmem:[#allocation5 + $0x5a4] sm:$0xf] }
  0xc7   :  { %1997 = vmatpush.bf16.msrb.mxu1 %v2581_v37  ;;  %v3432_v37 = vld [vmem:[#allocation5 + $0x4d4] sm:$0xf]  ;;  %v2797_v52 = vor.u32 %v3416_v33, %v2794_v34  ;;  %v2826_v33 = vld [vmem:[#allocation5 + $0x498] sm:$0xf0]  ;;  %v3482_v13 = vld [vmem:[#allocation5 + $0x664] sm:$0xf] }
  0xc8   :  { %2011 = vmatpush.bf16.msrb.mxu2 %v2645_v42  ;;  %v2997_v42 = vor.u32 %v3466_v26, %v2994_v27  ;;  %v2861_v53 = vor.u32 %v3432_v37, %v2858_v45  ;;  %v3408_v26 = vld [vmem:[#allocation5 + $0x414] sm:$0xf]  ;;  %v2762_v27 = vld [vmem:[#allocation5 + $0x418] sm:$0xf0] }
  0xc9   :  { %2025 = vmatpush.bf16.msrb.mxu3 %v2709_v50  ;;  %v3464_v50 = vld [vmem:[#allocation5 + $0x5d4] sm:$0xf]  ;;  %v2890_v37 = vld [vmem:[#allocation5 + $0x518] sm:$0xf0] }
  0xca   :  { %1984 = vmatpush.bf16.msrb.mxu0 %v2509_v56  ;;  %v3430_v56 = vld [vmem:[#allocation5 + $0x4c4] sm:$0xf]  ;;  %v2989_v57 = vor.u32 %v3464_v50, %v2986_v51  ;;  %v3440_v34 = vld [vmem:[#allocation5 + $0x514] sm:$0xf]  ;;  %v2765_v50 = vor.u32 %v3408_v26, %v2762_v27 }
  0xcb   :  { %1998 = vmatpush.bf16.msrb.mxu1 %v2573_v60  ;;  %v3446_v60 = vld [vmem:[#allocation5 + $0x544] sm:$0xf]  ;;  %v3456_v45 = vld [vmem:[#allocation5 + $0x594] sm:$0xf] }
  0xcc   :  { %2012 = vmatpush.bf16.msrb.mxu2 %v2637_v61  ;;  %v3462_v61 = vld [vmem:[#allocation5 + $0x5c4] sm:$0xf] }
  0xcd   :  { %2026 = vmatpush.bf16.msrb.mxu3 %v2701_v2  ;;  %v2778_v2 = vld [vmem:[#allocation5 + $0x438] sm:$0xf0]  ;;  %v3406_v51 = vld [vmem:[#allocation5 + $0x404] sm:$0xf] }
  0xce   :  { %1985 = vmatpush.bf16.msrb.mxu0 %v2501_v1  ;;  %v3460_v1 = vld [vmem:[#allocation5 + $0x5b4] sm:$0xf]  ;;  %v2781_v17 = vor.u32 %v3412_v0, %v2778_v2  ;;  %v3130_v2 = vld [vmem:[#allocation5 + $0x6f8] sm:$0xf0] }
  0xcf   :  { %1999 = vmatpush.bf16.msrb.mxu1 %v2565_v9  ;;  %v2845_v9 = vor.u32 %v3428_v3, %v2842_v58  ;;  %v3516_v3 = vld [vmem:[#allocation5 + $0x774] sm:$0xf] }
  0xd0   :  { %2013 = vmatpush.bf16.msrb.mxu2 %v2629_v11  ;;  %v2909_v11 = vor.u32 %v3444_v5, %v2906_v6  ;;  %v3532_v6 = vld [vmem:[#allocation5 + $0x7f4] sm:$0xf] }
  0xd1   :  { %2027 = vmatpush.bf16.msrb.mxu3 %v2693_v14  ;;  %1986 = vmatmul.bf16.vlgmr.msrb.gmra.mxu0 %v3697_v39  ;;  %v2786_v39 = vld [vmem:[#allocation5 + $0x448] sm:$0xf0]  ;;  %v3426_v14 = vld [vmem:[#allocation5 + $0x4a4] sm:$0xf] }
  0xd2   :  { %2034 = vmatpush.bf16.msra.mxu0 %v2813_v15  ;;  %2000 = vmatmul.bf16.vlgmr.msrb.gmra.mxu1 %v3701_v44  ;;  %v2978_v44 = vld [vmem:[#allocation5 + $0x5c8] sm:$0xf0]  ;;  %v2789_v62 = vor.u32 %v3414_v55, %v2786_v39  ;;  %v2973_v15 = vor.u32 %v3460_v1, %v2970_v10  ;;  %v2893_v55 = vor.u32 %v3440_v34, %v2890_v37  ;;  %v3422_v39 = vld [vmem:[#allocation5 + $0x484] sm:$0xf]  ;;  %v3258_v1 = vld [vmem:[#allocation5 + $0x7f8] sm:$0xf0] }
  0xd3   :  { %2048 = vmatpush.bf16.msra.mxu1 %v2877_v16  ;;  %2014 = vmatmul.bf16.vlgmr.msrb.gmra.mxu2 %v3699_v43  ;;  %v2914_v43 = vld [vmem:[#allocation5 + $0x548] sm:$0xf0]  ;;  %v2981_v4 = vor.u32 %v3462_v61, %v2978_v44  ;;  %v3454_v61 = vld [vmem:[#allocation5 + $0x584] sm:$0xf]  ;;  %v3050_v34 = vld [vmem:[#allocation5 + $0x658] sm:$0xf0] }
  0xd4   :  { %2062 = vmatpush.bf16.msra.mxu2 %v2941_v18  ;;  %2028 = vmatmul.bf16.vlgmr.msrb.gmra.mxu3 %v3703_v47  ;;  %v2853_v47 = vor.u32 %v3430_v56, %v2850_v59  ;;  %v2917_v63 = vor.u32 %v3446_v60, %v2914_v43  ;;  %v2834_v16 = vld [vmem:[#allocation5 + $0x4a8] sm:$0xf0]  ;;  %v3442_v18 = vld [vmem:[#allocation5 + $0x524] sm:$0xf]  ;;  %v3754_v59 = vpop.f32.mrf.mxu1  ;;  %v2957_v60 = vor.u32 %v3456_v45, %v2954_v48  ;;  %v3496_v37 = vld [vmem:[#allocation5 + $0x6d4] sm:$0xf] }
  0xd5   :  { %2076 = vmatpush.bf16.msra.mxu3 %v3005_v22  ;;  %v3745_v22 = vld [vmem:[#allocation7] sm:$0x3]  ;;  %v2837_v24 = vor.u32 %v3426_v14, %v2834_v16  ;;  %v2901_v25 = vor.u32 %v3442_v18, %v2898_v19  ;;  %v2818_v56 = vld [vmem:[#allocation5 + $0x488] sm:$0xf0]  ;;  %v3261_v18 = vor.u32 %v3532_v6, %v3258_v1  ;;  %v3492_v6 = vld [vmem:[#allocation5 + $0x6b4] sm:$0xf] }
  0xd6   :  { %2035 = vmatpush.bf16.msra.mxu0 %v2805_v28  ;;  %v3424_v28 = vld [vmem:[#allocation5 + $0x494] sm:$0xf]  ;;  %v334_v49 = vperm.slane %v3745_v22, 0  ;;  %v2882_v43 = vld [vmem:[#allocation5 + $0x508] sm:$0xf0]  ;;  %v2821_v58 = vor.u32 %v3422_v39, %v2818_v56 }
  0xd7   :  { %2049 = vmatpush.bf16.msra.mxu1 %v2869_v29  ;;  %v3747_v29 = vpop.f32.mrf.mxu2  ;;  %v2946_v44 = vld [vmem:[#allocation5 + $0x588] sm:$0xf0] }
  0xd8   :  { %2063 = vmatpush.bf16.msra.mxu2 %v2933_v30  ;;  %v2965_v30 = vor.u32 %v3458_v20, %v2962_v21  ;;  %v2949_v10 = vor.u32 %v3454_v61, %v2946_v44  ;;  %v3058_v14 = vld [vmem:[#allocation5 + $0x668] sm:$0xf0]  ;;  %v3514_v20 = vld [vmem:[#allocation5 + $0x764] sm:$0xf] }
  0xd9   :  { %2077 = vmatpush.bf16.msra.mxu3 %v2997_v42  ;;  %v3749_v42 = vpop.f32.mrf.mxu3  ;;  %v3122_v19 = vld [vmem:[#allocation5 + $0x6e8] sm:$0xf0]  ;;  %v3510_v44 = vld [vmem:[#allocation5 + $0x744] sm:$0xf] }
  0xda   :  { %2036 = vmatpush.bf16.msra.mxu0 %v2797_v52  ;;  %v2754_v52 = vld [vmem:[#allocation5 + $0x408] sm:$0xf0] }
  0xdb   :  { %2050 = vmatpush.bf16.msra.mxu1 %v2861_v53  ;;  %v3752_v53 = vpop.f32.mrf.mxu0  ;;  %v2757_v0 = vor.u32 %v3406_v51, %v2754_v52  ;;  %v3186_v21 = vld [vmem:[#allocation5 + $0x768] sm:$0xf0]  ;;  %v3512_v51 = vld [vmem:[#allocation5 + $0x754] sm:$0xf]  ;;  %v3178_v52 = vld [vmem:[#allocation5 + $0x758] sm:$0xf0] }
  0xdc   :  { %2064 = vmatpush.bf16.msra.mxu2 %v2925_v54  ;;  %v2829_v54 = vor.u32 %v3424_v28, %v2826_v33  ;;  %v3480_v33 = vld [vmem:[#allocation5 + $0x654] sm:$0xf]  ;;  %v3764_v45 = vpop.f32.mrf.mxu1 }
  0xdd   :  { %2078 = vmatpush.bf16.msra.mxu3 %v2989_v57  ;;  %v3438_v57 = vld [vmem:[#allocation5 + $0x504] sm:$0xf] }
  0xde   :  { %2037 = vmatpush.bf16.msra.mxu0 %v2789_v62  ;;  %v3484_v62 = vld [vmem:[#allocation5 + $0x674] sm:$0xf]  ;;  %v2885_v5 = vor.u32 %v3438_v57, %v2882_v43  ;;  %v3478_v57 = vld [vmem:[#allocation5 + $0x644] sm:$0xf] }
  0xdf   :  { %2051 = vmatpush.bf16.msra.mxu1 %v2853_v47  ;;  %v3066_v47 = vld [vmem:[#allocation5 + $0x678] sm:$0xf0]  ;;  %v3759_v16 = vpop.f32.mrf.mxu2  ;;  %v3494_v43 = vld [vmem:[#allocation5 + $0x6c4] sm:$0xf] }
  0xe0   :  { %2065 = vmatpush.bf16.msra.mxu2 %v2917_v63  ;;  %v3500_v63 = vld [vmem:[#allocation5 + $0x6f4] sm:$0xf] }
  0xe1   :  { %2079 = vmatpush.bf16.msra.mxu3 %v2981_v4  ;;  %v3194_v4 = vld [vmem:[#allocation5 + $0x778] sm:$0xf0] }
  0xe2   :  { %2038 = vmatpush.bf16.msra.mxu0 %v2781_v17  ;;  %v3069_v17 = vor.u32 %v3484_v62, %v3066_v47  ;;  %v3197_v12 = vor.u32 %v3516_v3, %v3194_v4  ;;  %v3526_v62 = vld [vmem:[#allocation5 + $0x7c4] sm:$0xf]  ;;  %v3234_v47 = vld [vmem:[#allocation5 + $0x7c8] sm:$0xf0] }
  0xe3   :  { %2052 = vmatpush.bf16.msra.mxu1 %v2845_v9  ;;  %v1708_v9 = vadd.f32 %v3741_v7, %v334_v49  ;;  %v3061_v7 = vor.u32 %v3482_v13, %v3058_v14  ;;  %v1763_v27 = vpop.f32.mrf.mxu0  ;;  %v3237_v1 = vor.u32 %v3526_v62, %v3234_v47  ;;  %v3486_v62 = vld [vmem:[#allocation5 + $0x684] sm:$0xf] }
  0xe4   :  { %2066 = vmatpush.bf16.msra.mxu2 %v2909_v11  ;;  %v3133_v11 = vor.u32 %v3500_v63, %v3130_v2 }
  0xe5   :  { %2080 = vmatpush.bf16.msra.mxu3 %v2973_v15  ;;  %v3498_v15 = vld [vmem:[#allocation5 + $0x6e4] sm:$0xf]  ;;  %v1722_v26 = vadd.f32 %v3743_v8, %v1708_v9  ;;  %v3528_v8 = vld [vmem:[#allocation5 + $0x7d4] sm:$0xf] }
  0xe6   :  { %2039 = vmatpush.bf16.msra.mxu0 %v2773_v23  ;;  %v3761_v23 = vpop.f32.mrf.mxu3  ;;  %v3125_v28 = vor.u32 %v3498_v15, %v3122_v19  ;;  %v3474_v19 = vld [vmem:[#allocation5 + $0x624] sm:$0xf] }
  0xe7   :  { %2053 = vmatpush.bf16.msra.mxu1 %v2837_v24  ;;  %v3530_v24 = vld [vmem:[#allocation5 + $0x7e4] sm:$0xf]  ;;  %v1736_v39 = vadd.f32 %v3747_v29, %v1722_v26  ;;  %v3774_v63 = vpop.f32.mrf.mxu2 }
  0xe8   :  { %2067 = vmatpush.bf16.msra.mxu2 %v2901_v25  ;;  %v3250_v25 = vld [vmem:[#allocation5 + $0x7e8] sm:$0xf0] }
  0xe9   :  { %2081 = vmatpush.bf16.msra.mxu3 %v2965_v30  ;;  %v3189_v30 = vor.u32 %v3514_v20, %v3186_v21  ;;  %v3253_v48 = vor.u32 %v3530_v24, %v3250_v25  ;;  %v3026_v20 = vld [vmem:[#allocation5 + $0x628] sm:$0xf0]  ;;  %v3490_v21 = vld [vmem:[#allocation5 + $0x6a4] sm:$0xf] }
  0xea   :  { %2040 = vmatpush.bf16.msra.mxu0 %v2765_v50  ;;  %v3114_v50 = vld [vmem:[#allocation5 + $0x6d8] sm:$0xf0]  ;;  %v3090_v25 = vld [vmem:[#allocation5 + $0x6a8] sm:$0xf0] }
  0xeb   :  { %2054 = vmatpush.bf16.msra.mxu1 %v2829_v54  ;;  %v3242_v54 = vld [vmem:[#allocation5 + $0x7d8] sm:$0xf0]  ;;  %v3117_v56 = vor.u32 %v3496_v37, %v3114_v50  ;;  %v1765_v9 = vpop.f32.mrf.mxu0 }
  0xec   :  { %2068 = vmatpush.bf16.msra.mxu2 %v2893_v55  ;;  %v3053_v55 = vor.u32 %v3480_v33, %v3050_v34  ;;  %v3245_v61 = vor.u32 %v3528_v8, %v3242_v54  ;;  %v3029_v33 = vor.u32 %v3474_v19, %v3026_v20  ;;  %v3093_v34 = vor.u32 %v3490_v21, %v3090_v25  ;;  %v3018_v50 = vld [vmem:[#allocation5 + $0x618] sm:$0xf0] }
  0xed   :  { %2082 = vmatpush.bf16.msra.mxu3 %v2957_v60  ;;  %v3042_v60 = vld [vmem:[#allocation5 + $0x648] sm:$0xf0]  ;;  %v3082_v54 = vld [vmem:[#allocation5 + $0x698] sm:$0xf0] }
  0xee   :  { %2041 = vmatpush.bf16.msra.mxu0 %v2757_v0  ;;  %v3045_v29 = vor.u32 %v3478_v57, %v3042_v60  ;;  %v1750_v0 = vadd.f32 %v3749_v42, %v1736_v39  ;;  %v3777_v2 = vpop.f32.mrf.mxu3  ;;  %v3780_v42 = vpop.f32.mrf.mxu1  ;;  %v3146_v39 = vld [vmem:[#allocation5 + $0x718] sm:$0xf0]  ;;  %v3520_v57 = vld [vmem:[#allocation5 + $0x794] sm:$0xf] }
  0xef   :  { %2055 = vmatpush.bf16.msra.mxu1 %v2821_v58  ;;  %v3476_v58 = vld [vmem:[#allocation5 + $0x634] sm:$0xf]  ;;  %v3210_v60 = vld [vmem:[#allocation5 + $0x798] sm:$0xf0] }
  0xf0   :  { %2069 = vmatpush.bf16.msra.mxu2 %v2885_v5  ;;  %v3034_v5 = vld [vmem:[#allocation5 + $0x638] sm:$0xf0]  ;;  %v1764_v14 = vadd.f32 %v1763_v27, %v1750_v0  ;;  %v3213_v47 = vor.u32 %v3520_v57, %v3210_v60  ;;  %v3138_v0 = vld [vmem:[#allocation5 + $0x708] sm:$0xf0] }
  0xf1   :  { %2083 = vmatpush.bf16.msra.mxu3 %v2949_v10  ;;  %2042 = vmatmul.bf16.vlgmr.msra.gmra.mxu0 %v3709_v31  ;;  %v3181_v31 = vor.u32 %v3512_v51, %v3178_v52  ;;  %v3162_v10 = vld [vmem:[#allocation5 + $0x738] sm:$0xf0]  ;;  %v3037_v13 = vor.u32 %v3476_v58, %v3034_v5  ;;  %v3488_v51 = vld [vmem:[#allocation5 + $0x694] sm:$0xf]  ;;  %v1793_v52 = vpop.f32.mrf.mxu2  ;;  %v3202_v58 = vld [vmem:[#allocation5 + $0x788] sm:$0xf0] }
  0xf2   :  { %2090 = vmatpush.bf16.msrb.mxu0 %v3069_v17  ;;  %2056 = vmatmul.bf16.vlgmr.msra.gmra.mxu1 %v3713_v36  ;;  %v3170_v36 = vld [vmem:[#allocation5 + $0x748] sm:$0xf0]  ;;  %v1778_v27 = vadd.f32 %v3764_v45, %v1764_v14 }
  0xf3   :  { %2104 = vmatpush.bf16.msrb.mxu1 %v3133_v11  ;;  %2070 = vmatmul.bf16.vlgmr.msra.gmra.mxu2 %v3711_v35  ;;  %v3106_v35 = vld [vmem:[#allocation5 + $0x6c8] sm:$0xf0]  ;;  %v3173_v4 = vor.u32 %v3510_v44, %v3170_v36  ;;  %v3524_v11 = vld [vmem:[#allocation5 + $0x7b4] sm:$0xf]  ;;  %v3470_v36 = vld [vmem:[#allocation5 + $0x604] sm:$0xf] }
  0xf4   :  { %2118 = vmatpush.bf16.msrb.mxu2 %v3197_v12  ;;  %2084 = vmatmul.bf16.vlgmr.msra.gmra.mxu3 %v3715_v40  ;;  %v1710_v40 = vadd.f32 %v3752_v53, %v334_v49  ;;  %v3109_v3 = vor.u32 %v3494_v43, %v3106_v35  ;;  %v3098_v49 = vld [vmem:[#allocation5 + $0x6b8] sm:$0xf0]  ;;  %v3508_v53 = vld [vmem:[#allocation5 + $0x734] sm:$0xf]  ;;  %v3085_v35 = vor.u32 %v3488_v51, %v3082_v54 }
  0xf5   :  { %2132 = vmatpush.bf16.msrb.mxu3 %v3261_v18  ;;  %v3226_v12 = vld [vmem:[#allocation5 + $0x7b8] sm:$0xf0]  ;;  %v3101_v15 = vor.u32 %v3492_v6, %v3098_v49  ;;  %v3165_v18 = vor.u32 %v3508_v53, %v3162_v10 }
  0xf6   :  { %2091 = vmatpush.bf16.msrb.mxu0 %v3061_v7  ;;  %v1724_v17 = vadd.f32 %v3754_v59, %v1710_v40  ;;  %v3229_v24 = vor.u32 %v3524_v11, %v3226_v12  ;;  %v3506_v7 = vld [vmem:[#allocation5 + $0x724] sm:$0xf]  ;;  %v3154_v59 = vld [vmem:[#allocation5 + $0x728] sm:$0xf0]  ;;  %v1833_v45 = vpop.f32.mrf.mxu1 }
  0xf7   :  { %2105 = vmatpush.bf16.msrb.mxu1 %v3125_v28  ;;  %v3522_v28 = vld [vmem:[#allocation5 + $0x7a4] sm:$0xf]  ;;  %v3157_v37 = vor.u32 %v3506_v7, %v3154_v59  ;;  %v3010_v40 = vld [vmem:[#allocation5 + $0x608] sm:$0xf0] }
  0xf8   :  { %2119 = vmatpush.bf16.msrb.mxu2 %v3189_v30  ;;  %v1738_v26 = vadd.f32 %v3759_v16, %v1724_v17  ;;  %v3218_v30 = vld [vmem:[#allocation5 + $0x7a8] sm:$0xf0]  ;;  %v3013_v5 = vor.u32 %v3470_v36, %v3010_v40 }
  0xf9   :  { %2133 = vmatpush.bf16.msrb.mxu3 %v3253_v48  ;;  %v3472_v48 = vld [vmem:[#allocation5 + $0x614] sm:$0xf]  ;;  %v3221_v8 = vor.u32 %v3522_v28, %v3218_v30  ;;  %v1847_v49 = vpop.f32.mrf.mxu2 }
  0xfa   :  { %2092 = vmatpush.bf16.msrb.mxu0 %v3053_v55  ;;  %v3504_v55 = vld [vmem:[#allocation5 + $0x714] sm:$0xf]  ;;  %v1752_v16 = vadd.f32 %v3761_v23, %v1738_v26  ;;  %v3021_v43 = vor.u32 %v3472_v48, %v3018_v50  ;;  %v3502_v23 = vld [vmem:[#allocation5 + $0x704] sm:$0xf] }
  0xfb   :  { %2106 = vmatpush.bf16.msrb.mxu1 %v3117_v56  ;;  %v1807_v56 = vpop.f32.mrf.mxu3  ;;  %v3149_v44 = vor.u32 %v3504_v55, %v3146_v39 }
  0xfc   :  { %2120 = vmatpush.bf16.msrb.mxu2 %v3181_v31  ;;  %v1819_v31 = vpop.f32.mrf.mxu0 }
  0xfd   :  { %2134 = vmatpush.bf16.msrb.mxu3 %v3245_v61  ;;  %v1792_v61 = vadd.f32 %v3774_v63, %v1778_v27 }
  0xfe   :  { %2093 = vmatpush.bf16.msrb.mxu0 %v3045_v29  ;;  %v3074_v29 = vld [vmem:[#allocation5 + $0x688] sm:$0xf0] }
  0xff   :  { %2107 = vmatpush.bf16.msrb.mxu1 %v3109_v3  ;;  %v1766_v3 = vadd.f32 %v1765_v9, %v1752_v16  ;;  %v1806_v6 = vadd.f32 %v3777_v2, %v1792_v61  ;;  %v3077_v63 = vor.u32 %v3486_v62, %v3074_v29 }
 0x100   :  { %2121 = vmatpush.bf16.msrb.mxu2 %v3173_v4  ;;  %v3518_v4 = vld [vmem:[#allocation5 + $0x784] sm:$0xf] }
 0x101   :  { %2135 = vmatpush.bf16.msrb.mxu3 %v3237_v1  ;;  %v3141_v1 = vor.u32 %v3502_v23, %v3138_v0  ;;  %v3205_v53 = vor.u32 %v3518_v4, %v3202_v58  ;;  %v1780_v10 = vadd.f32 %v3780_v42, %v1766_v3  ;;  %v1820_v17 = vadd.f32 %v1819_v31, %v1806_v6 }
 0x102   :  { %2094 = vmatpush.bf16.msrb.mxu0 %v3037_v13  ;;  %v1835_v13 = vpop.f32.mrf.mxu1  ;;  %v335_v31 = vperm.slane %v3745_v22, 1 }
 0x103   :  { %2108 = vmatpush.bf16.msrb.mxu1 %v3101_v15  ;;  %v1861_v11 = vpop.f32.mrf.mxu3  ;;  %v1794_v12 = vadd.f32 %v1793_v52, %v1780_v10  ;;  %v1834_v14 = vadd.f32 %v1833_v45, %v1820_v17 }
 0x104   :  { %2122 = vmatpush.bf16.msrb.mxu2 %v3165_v18  ;;  %v1821_v9 = vpop.f32.mrf.mxu0  ;;  %v1849_v18 = vpop.f32.mrf.mxu2 }
 0x105   :  { %2136 = vmatpush.bf16.msrb.mxu3 %v3229_v24  ;;  %v1808_v2 = vadd.f32 %v1807_v56, %v1794_v12  ;;  %v1848_v15 = vadd.f32 %v1847_v49, %v1834_v14 }
 0x106   :  { %2095 = vmatpush.bf16.msrb.mxu0 %v3029_v33 }
 0x107   :  { %2109 = vmatpush.bf16.msrb.mxu1 %v3093_v34  ;;  %v1822_v42 = vadd.f32 %v1821_v9, %v1808_v2  ;;  %v1862_v19 = vadd.f32 %v1861_v11, %v1848_v15 }
 0x108   :  { %2123 = vmatpush.bf16.msrb.mxu2 %v3157_v37 }
 0x109   :  { %2137 = vmatpush.bf16.msrb.mxu3 %v3221_v8  ;;  %v1836_v25 = vadd.f32 %v1835_v13, %v1822_v42 }
 0x10a   :  { %2096 = vmatpush.bf16.msrb.mxu0 %v3021_v43 }
 0x10b   :  { %2110 = vmatpush.bf16.msrb.mxu1 %v3085_v35  ;;  %v1863_v20 = vpop.f32.mrf.mxu3  ;;  %v1850_v59 = vadd.f32 %v1849_v18, %v1836_v25 }
 0x10c   :  { %2124 = vmatpush.bf16.msrb.mxu2 %v3149_v44 }
 0x10d   :  { %2138 = vmatpush.bf16.msrb.mxu3 %v3213_v47 }
 0x10e   :  { %2097 = vmatpush.bf16.msrb.mxu0 %v3013_v5  ;;  %v1875_v21 = vpop.f32.mrf.mxu0 }
 0x10f   :  { %2111 = vmatpush.bf16.msrb.mxu1 %v3077_v63  ;;  %v1889_v24 = vpop.f32.mrf.mxu1  ;;  %v1876_v7 = vadd.f32 %v1875_v21, %v1862_v19 }
 0x110   :  { %2125 = vmatpush.bf16.msrb.mxu2 %v3141_v1 }
 0x111   :  { %2139 = vmatpush.bf16.msrb.mxu3 %v3205_v53  ;;  %2098 = vmatmul.bf16.vlgmr.msrb.gmra.mxu0 %v3721_v32  ;;  %v1890_v26 = vadd.f32 %v1889_v24, %v1876_v7  ;;  %v1864_v32 = vadd.f32 %v1863_v20, %v1850_v59 }
 0x112   :  { %2112 = vmatmul.bf16.vlgmr.msrb.gmra.mxu1 %v3725_v41 }
 0x113   :  { %2126 = vmatmul.bf16.vlgmr.msrb.gmra.mxu2 %v3723_v38 }
 0x114   :  { %2140 = vmatmul.bf16.vlgmr.msrb.gmra.mxu3 %v3727_v46 }
 0x116   :  { %v1903_v28 = vpop.f32.mrf.mxu2  ;;  %v1877_v41 = vpop.f32.mrf.mxu0 }
 0x117   :  { %v1904_v30 = vadd.f32 %v1903_v28, %v1890_v26  ;;  %v1917_v33 = vpop.f32.mrf.mxu3  ;;  %v1878_v38 = vadd.f32 %v1877_v41, %v1864_v32  ;;  %v1891_v34 = vpop.f32.mrf.mxu1 }
 0x119   :  { %v1918_v27 = vadd.f32 %v1917_v33, %v1904_v30  ;;  %v1892_v46 = vadd.f32 %v1891_v34, %v1878_v38 }
 0x11b   :  { %v2146_v37 = vmax.f32 %v1918_v27, 0.0 }
 0x11d   :  { %2150 = vst [vmem:[#allocation8] sm:$0xff] %v2146_v37 }
 0x11e   :  { %v1905_v48 = vpop.f32.mrf.mxu2 }
 0x11f   :  { %v1906_v50 = vadd.f32 %v1905_v48, %v1892_v46  ;;  %v1919_v51 = vpop.f32.mrf.mxu3 }
 0x121   :  { %v1920_v52 = vadd.f32 %v1919_v51, %v1906_v50 }
 0x123   :  { %v2148_v8 = vmax.f32 %v1920_v52, 0.0 }
 0x125   :  { %2152 = vst [vmem:[#allocation8 + $0x10] sm:$0xff] %v2148_v8 }
 0x12e   :  { %v1931_v54 = vpop.f32.mrf.mxu0 }
 0x12f   :  { %v1945_v55 = vpop.f32.mrf.mxu1  ;;  %v1932_v60 = vadd.f32 %v1931_v54, %v335_v31 }
 0x131   :  { %v1946_v61 = vadd.f32 %v1945_v55, %v1932_v60 }
 0x136   :  { %v1959_v39 = vpop.f32.mrf.mxu2  ;;  %v1933_v56 = vpop.f32.mrf.mxu0 }
 0x137   :  { %v1973_v16 = vpop.f32.mrf.mxu3  ;;  %v1947_v57 = vpop.f32.mrf.mxu1  ;;  %v1960_v36 = vadd.f32 %v1959_v39, %v1946_v61  ;;  %v1934_v40 = vadd.f32 %v1933_v56, %v335_v31 }
 0x139   :  { %v1974_v47 = vadd.f32 %v1973_v16, %v1960_v36  ;;  %v1948_v23 = vadd.f32 %v1947_v57, %v1934_v40 }
 0x13e   :  { %v1961_v45 = vpop.f32.mrf.mxu2 }
 0x13f   :  { %v1975_v43 = vpop.f32.mrf.mxu3  ;;  %v1962_v58 = vadd.f32 %v1961_v45, %v1948_v23 }
 0x141   :  { %v1976_v22 = vadd.f32 %v1975_v43, %v1962_v58 }
 0x14e   :  { %v1987_v35 = vpop.f32.mrf.mxu0 }
 0x14f   :  { %v2001_v44 = vpop.f32.mrf.mxu1  ;;  %v1988_v3 = vadd.f32 %v1987_v35, %v1974_v47 }
 0x151   :  { %v2002_v5 = vadd.f32 %v2001_v44, %v1988_v3 }
 0x156   :  { %v2015_v62 = vpop.f32.mrf.mxu2  ;;  %v1989_v0 = vpop.f32.mrf.mxu0 }
 0x157   :  { %v2029_v29 = vpop.f32.mrf.mxu3  ;;  %v2003_v4 = vpop.f32.mrf.mxu1  ;;  %v2016_v49 = vadd.f32 %v2015_v62, %v2002_v5  ;;  %v1990_v10 = vadd.f32 %v1989_v0, %v1976_v22 }
 0x159   :  { %v2030_v17 = vadd.f32 %v2029_v29, %v2016_v49  ;;  %v2004_v12 = vadd.f32 %v2003_v4, %v1990_v10 }
 0x15e   :  { %v2017_v6 = vpop.f32.mrf.mxu2 }
 0x15f   :  { %v2031_v63 = vpop.f32.mrf.mxu3  ;;  %v2018_v14 = vadd.f32 %v2017_v6, %v2004_v12 }
 0x161   :  { %v2032_v18 = vadd.f32 %v2031_v63, %v2018_v14 }
 0x16e   :  { %v2043_v1 = vpop.f32.mrf.mxu0 }
 0x16f   :  { %v2057_v53 = vpop.f32.mrf.mxu1  ;;  %v2044_v9 = vadd.f32 %v2043_v1, %v2030_v17 }
 0x171   :  { %v2058_v15 = vadd.f32 %v2057_v53, %v2044_v9 }
 0x176   :  { %v2071_v11 = vpop.f32.mrf.mxu2  ;;  %v2045_v2 = vpop.f32.mrf.mxu0 }
 0x177   :  { %v2085_v13 = vpop.f32.mrf.mxu3  ;;  %v2059_v42 = vpop.f32.mrf.mxu1  ;;  %v2072_v19 = vadd.f32 %v2071_v11, %v2058_v15  ;;  %v2046_v20 = vadd.f32 %v2045_v2, %v2032_v18 }
 0x179   :  { %v2086_v24 = vadd.f32 %v2085_v13, %v2072_v19  ;;  %v2060_v59 = vadd.f32 %v2059_v42, %v2046_v20 }
 0x17e   :  { %v2073_v21 = vpop.f32.mrf.mxu2 }
 0x17f   :  { %v2087_v25 = vpop.f32.mrf.mxu3  ;;  %v2074_v32 = vadd.f32 %v2073_v21, %v2060_v59 }
 0x181   :  { %v2088_v33 = vadd.f32 %v2087_v25, %v2074_v32 }
 0x18e   :  { %v2099_v7 = vpop.f32.mrf.mxu0 }
 0x18f   :  { %v2100_v26 = vadd.f32 %v2099_v7, %v2086_v24  ;;  %v2113_v28 = vpop.f32.mrf.mxu1 }
 0x191   :  { %v2114_v30 = vadd.f32 %v2113_v28, %v2100_v26 }
 0x196   :  { %v2127_v41 = vpop.f32.mrf.mxu2  ;;  %v2101_v34 = vpop.f32.mrf.mxu0 }
 0x197   :  { %v2128_v38 = vadd.f32 %v2127_v41, %v2114_v30  ;;  %v2141_v27 = vpop.f32.mrf.mxu3  ;;  %v2102_v46 = vadd.f32 %v2101_v34, %v2088_v33  ;;  %v2115_v50 = vpop.f32.mrf.mxu1 }
 0x199   :  { %v2142_v37 = vadd.f32 %v2141_v27, %v2128_v38  ;;  %v2116_v51 = vadd.f32 %v2115_v50, %v2102_v46 }
 0x19b   :  { %v2147_v48 = vmax.f32 %v2142_v37, 0.0 }
 0x19d   :  { %2151 = vst [vmem:[#allocation8 + $0x8] sm:$0xff] %v2147_v48 }
 0x19e   :  { %v2129_v52 = vpop.f32.mrf.mxu2 }
 0x19f   :  { %v2130_v8 = vadd.f32 %v2129_v52, %v2116_v51  ;;  %v2143_v54 = vpop.f32.mrf.mxu3 }
 0x1a1   :  { %v2144_v55 = vadd.f32 %v2143_v54, %v2130_v8 }
 0x1a3   :  { %v2149_v39 = vmax.f32 %v2144_v55, 0.0 }
 0x1a5   :  { %2153 = vst [vmem:[#allocation8 + $0x18] sm:$0xff] %v2149_v39 }
 0x1a6   :  { %2166 = dma.vmem_to_hbm [thread:$0]  %s2159_s2, 512, %s2161_s5, [#allocation4], %s3654_s6, %s3654_s6, %s3655_s7  }
 0x1a7   :  { %3644 = dma.done.wait [#allocation4], 512  }
 0x1a8   :  { %3645 = vsyncadd [#allocation4], 4294966784 }
 0x1a9   :  { %2171 = vsyncpa [#allocation3], 1 }
 0x1aa   :  { %2172 = vsyncpa [#allocation6], 1 }
 0x1ab   :  { %2173 = vsyncpa [#allocation4], 1 }

</bundles_post_ra>
